<compile_context>
chip_gen: v5e
topology: v5e:2x2
jax: 0.10.0
libtpu: 0.0.40
codegen_flags: <defaults>
</compile_context>

<pallas_src>
import math

import jax
import jax.numpy as jnp
import numpy as np
from jax import lax
from jax.experimental import pallas as pl
from jax.experimental.pallas import tpu as pltpu


def _pick_vmem_limit():
    """~75% of physical VMEM (128 MiB v5e/v6e, 64 MiB v7x); safe fallback."""
    try:
        cap = int(pltpu.get_tpu_info().vmem_capacity_bytes)
        if cap <= 0:
            raise ValueError("bad vmem capacity")
        return (cap * 3) // 4
    except Exception:
        return 32 * 1024 * 1024


def make_encoder_block(B, S, D, H, F, eps, TQ=None, out_dtype=jnp.float32,
                       single_buffer_weights=True):
    if TQ is None:
        TQ = S
    assert D % H == 0 and S % TQ == 0
    # For production shapes keep TQ a multiple of 8 and D a multiple of 128
    # so output stores are lane-dense (unmasked vst).
    dk = D // H
    scale = 1.0 / math.sqrt(dk)
    n_q_tiles = S // TQ

    bf16 = jnp.bfloat16
    f32 = jnp.float32

    def _layer_norm(x, gamma, beta):
        # f32 elementwise math; rsqrt goes to the EUP.
        mean = jnp.mean(x, axis=-1, keepdims=True)
        var = jnp.mean((x - mean) ** 2, axis=-1, keepdims=True)
        return (x - mean) * lax.rsqrt(var + eps) * gamma + beta

    def _softmax(s):
        m = jnp.max(s, axis=-1, keepdims=True)
        e = jnp.exp(s - m)
        denom = jnp.sum(e, axis=-1, keepdims=True)
        # EUP approximate reciprocal: turns the divide into a cheap multiply.
        return e * pl.reciprocal(denom, approx=True)

    def kernel(xq_ref, xkv_ref, bias_ref,
               wq_ref, bq_ref, wk_ref, bk_ref, wv_ref, bv_ref, wo_ref, bo_ref,
               ln1_g_ref, ln1_b_ref,
               w1_ref, b1_ref, w2_ref, b2_ref,
               ln2_g_ref, ln2_b_ref,
               o_ref,
               k_scr, v_scr):
        # ---- one-time (per batch row) K/V projection into VMEM scratch ------
        # qi is the innermost ("arbitrary") grid axis, so qi == 0 marks the
        # first tile of a new batch element on whichever core runs it.
        @pl.when(pl.program_id(1) == 0)
        def _():
            x_kv = xkv_ref[0]                         # [S, D] bf16
            k_scr[...] = (jnp.dot(x_kv, wk_ref[...],
                                  preferred_element_type=f32)
                          + bk_ref[...]).astype(bf16)
            v_scr[...] = (jnp.dot(x_kv, wv_ref[...],
                                  preferred_element_type=f32)
                          + bv_ref[...]).astype(bf16)

        x_q = xq_ref[0]                               # [TQ, D] f32 (residual)
        bias = bias_ref[0].astype(f32)                # [TQ, S] additive mask

        # ---- Q projection for this tile (bf16 MXU, f32 accumulation) --------
        q = (jnp.dot(x_q.astype(bf16), wq_ref[...],
                     preferred_element_type=f32) + bq_ref[...]).astype(bf16)
        k = k_scr[...]                                # [S, D] bf16 (cached)
        v = v_scr[...]                                # [S, D] bf16 (cached)

        # ---- attention: per-head, output projection fused --------------------
        mha = jnp.zeros((TQ, D), f32)
        for h in range(H):        # static unroll (small H at these shapes)
            sl = slice(h * dk, (h + 1) * dk)
            qh = q[:, sl]                             # [TQ, dk] bf16
            kh = k[:, sl]                             # [S,  dk] bf16
            vh = v[:, sl]                             # [S,  dk] bf16
            # q @ k^T without materializing a transpose (contract last dims).
            s = lax.dot_general(qh, kh, (((1,), (1,)), ((), ())),
                                preferred_element_type=f32) * scale
            p = _softmax(s + bias)                    # [TQ, S] f32
            ctx = jnp.dot(p.astype(bf16), vh, preferred_element_type=f32)
            # Fold this head's slice of Wo directly into the accumulator.
            mha = mha + jnp.dot(ctx.astype(bf16), wo_ref[sl, :],
                                preferred_element_type=f32)
        mha = mha + bo_ref[...]

        # ---- residual + LayerNorm 1 (f32) ------------------------------------
        h1 = _layer_norm(mha + x_q, ln1_g_ref[...], ln1_b_ref[...])

        # ---- feed forward (bf16 MXU, f32 accumulation) ------------------------
        ff = jnp.dot(h1.astype(bf16), w1_ref[...],
                     preferred_element_type=f32) + b1_ref[...]
        ff = jnp.maximum(ff, 0.0)
        ff = jnp.dot(ff.astype(bf16), w2_ref[...],
                     preferred_element_type=f32) + b2_ref[...]

        # ---- residual + LayerNorm 2 (f32) ------------------------------------
        out = _layer_norm(ff + h1, ln2_g_ref[...], ln2_b_ref[...])
        o_ref[0] = out.astype(o_ref.dtype)

    # Constant-index specs (weights / biases / LN params): fetched once,
    # single-buffered when supported so they don't double the VMEM footprint.
    buffered = (pl.Buffered(1)
                if (single_buffer_weights and hasattr(pl, "Buffered"))
                else None)

    def _const(shape):
        idx = lambda *args, _s=len(shape): (0,) * _s
        if buffered is not None:
            return pl.BlockSpec(shape, idx, pipeline_mode=buffered)
        return pl.BlockSpec(shape, idx)

    in_specs = [
        pl.BlockSpec((1, TQ, D), lambda b, qi: (b, qi, 0)),  # x (query rows, f32)
        pl.BlockSpec((1, S, D), lambda b, qi: (b, 0, 0)),    # x (key/value rows, bf16)
        pl.BlockSpec((1, TQ, S), lambda b, qi: (b, qi, 0)),  # additive mask bias
        _const((D, D)), _const((1, D)),                      # Wq, bq
        _const((D, D)), _const((1, D)),                      # Wk, bk
        _const((D, D)), _const((1, D)),                      # Wv, bv
        _const((D, D)), _const((1, D)),                      # Wo, bo
        _const((1, D)), _const((1, D)),                      # LN1 gamma, beta
        _const((D, F)), _const((1, F)),                      # W1, b1
        _const((F, D)), _const((1, D)),                      # W2, b2
        _const((1, D)), _const((1, D)),                      # LN2 gamma, beta
    ]
    out_spec = pl.BlockSpec((1, TQ, D), lambda b, qi: (b, qi, 0))

    call = pl.pallas_call(
        kernel,
        out_shape=jax.ShapeDtypeStruct((B, S, D), out_dtype),
        grid_spec=pltpu.PrefetchScalarGridSpec(
            num_scalar_prefetch=0,
            grid=(B, n_q_tiles),
            in_specs=in_specs,
            out_specs=out_spec,
            scratch_shapes=[pltpu.VMEM((S, D), bf16),   # cached K
                            pltpu.VMEM((S, D), bf16)],  # cached V
        ),
        compiler_params=pltpu.CompilerParams(
            # qi carries the K/V scratch across steps -> "arbitrary";
            # B is independent -> "parallel" (v7x megacore).
            dimension_semantics=("parallel", "arbitrary"),
            vmem_limit_bytes=_pick_vmem_limit(),
        ),
    )

    def fwd(x, mask, params):
        # Additive attention bias precomputed once outside the kernel and
        # streamed in bf16 (half the DMA bytes of an f32 mask).
        bias = jnp.where(mask == 0, jnp.float32(-1e9),
                         jnp.float32(0.0)).astype(bf16)
        as_bf = lambda a: a.astype(bf16)
        return call(
            x,                      # f32 query/residual stream
            x.astype(bf16),         # bf16 key/value stream (MXU only)
            bias,
            as_bf(params["wq"]), params["bq"],
            as_bf(params["wk"]), params["bk"],
            as_bf(params["wv"]), params["bv"],
            as_bf(params["wo"]), params["bo"],
            params["ln1_g"], params["ln1_b"],
            as_bf(params["w1"]), params["b1"],
            as_bf(params["w2"]), params["b2"],
            params["ln2_g"], params["ln2_b"])

    return fwd


def encoder_block_reference(x, mask, p, H, eps):
    """Pure-JAX f32 reference mirroring the PyTorch module semantics."""
    B, S, D = x.shape
    dk = D // H

    def ln(v, g, b):
        mean = jnp.mean(v, axis=-1, keepdims=True)
        var = jnp.mean((v - mean) ** 2, axis=-1, keepdims=True)
        return (v - mean) / jnp.sqrt(var + eps) * g + b

    q = x @ p["wq"] + p["bq"]
    k = x @ p["wk"] + p["bk"]
    v = x @ p["wv"] + p["bv"]
    q = q.reshape(B, S, H, dk).transpose(0, 2, 1, 3)
    k = k.reshape(B, S, H, dk).transpose(0, 2, 1, 3)
    v = v.reshape(B, S, H, dk).transpose(0, 2, 1, 3)
    s = jnp.einsum("bhqd,bhkd->bhqk", q, k) / math.sqrt(dk)
    s = jnp.where(mask[:, None, :, :] == 0, -1e9, s)
    a = jax.nn.softmax(s, axis=-1)
    o = jnp.einsum("bhqk,bhkd->bhqd", a, v).transpose(0, 2, 1, 3).reshape(B, S, D)
    mha = o @ p["wo"] + p["bo"]
    h1 = ln(mha + x, p["ln1_g"], p["ln1_b"])
    ff = jnp.maximum(h1 @ p["w1"] + p["b1"], 0.0) @ p["w2"] + p["b2"]
    return ln(ff + h1, p["ln2_g"], p["ln2_b"])


if __name__ == "__main__":
    B, S, D, H, F = 2, 8, 32, 4, 64
    eps = 1e-6

    key = jax.random.PRNGKey(0)
    ks = jax.random.split(key, 16)

    def w(k, shape, s=0.05):
        return jax.random.normal(k, shape, dtype=jnp.float32) * s

    params = {
        "wq": w(ks[0], (D, D)), "bq": w(ks[1], (1, D)),
        "wk": w(ks[2], (D, D)), "bk": w(ks[3], (1, D)),
        "wv": w(ks[4], (D, D)), "bv": w(ks[5], (1, D)),
        "wo": w(ks[6], (D, D)), "bo": w(ks[7], (1, D)),
        "ln1_g": jnp.ones((1, D), jnp.float32), "ln1_b": jnp.zeros((1, D), jnp.float32),
        "w1": w(ks[8], (D, F)), "b1": w(ks[9], (1, F)),
        "w2": w(ks[10], (F, D)), "b2": w(ks[11], (1, D)),
        "ln2_g": jnp.ones((1, D), jnp.float32), "ln2_b": jnp.zeros((1, D), jnp.float32),
    }

    x = jax.random.normal(ks[12], (B, S, D), dtype=jnp.float32)
    # Padding-style mask: batch 0 attends to everything, batch 1 masks last 2 keys.
    mask = jnp.ones((B, S, S), dtype=jnp.float32)
    mask = mask.at[1, :, S - 2:].set(0.0)

    try:
        fwd = make_encoder_block(B, S, D, H, F, eps, single_buffer_weights=True)
        out = jax.block_until_ready(fwd(x, mask, params))
    except Exception:
        # pl.Buffered(1) not accepted by this jax/libtpu build on the
        # auto-pipeline path — fall back to default double-buffered specs.
        fwd = make_encoder_block(B, S, D, H, F, eps, single_buffer_weights=False)
        out = jax.block_until_ready(fwd(x, mask, params))

    ref = encoder_block_reference(x, mask, params, H, eps)
    # bf16 MXU operands (f32 accumulation) => relaxed tolerance vs. f32 reference.
    np.testing.assert_allclose(np.asarray(out), np.asarray(ref), rtol=2e-2, atol=2e-2)

    print("KERNEL_OK")
</pallas_src>

<mosaic_0001>
module attributes {stable_mosaic.version = 11 : i64} {
  func.func @kernel(%arg0: i32, %arg1: i32, %arg2: memref<1x8x32xf32, #tpu.memory_space<vmem>>, %arg3: memref<1x8x32xbf16, #tpu.memory_space<vmem>>, %arg4: memref<1x8x8xbf16, #tpu.memory_space<vmem>>, %arg5: memref<32x32xbf16, #tpu.memory_space<vmem>>, %arg6: memref<1x32xf32, #tpu.memory_space<vmem>>, %arg7: memref<32x32xbf16, #tpu.memory_space<vmem>>, %arg8: memref<1x32xf32, #tpu.memory_space<vmem>>, %arg9: memref<32x32xbf16, #tpu.memory_space<vmem>>, %arg10: memref<1x32xf32, #tpu.memory_space<vmem>>, %arg11: memref<32x32xbf16, #tpu.memory_space<vmem>>, %arg12: memref<1x32xf32, #tpu.memory_space<vmem>>, %arg13: memref<1x32xf32, #tpu.memory_space<vmem>>, %arg14: memref<1x32xf32, #tpu.memory_space<vmem>>, %arg15: memref<32x64xbf16, #tpu.memory_space<vmem>>, %arg16: memref<1x64xf32, #tpu.memory_space<vmem>>, %arg17: memref<64x32xbf16, #tpu.memory_space<vmem>>, %arg18: memref<1x32xf32, #tpu.memory_space<vmem>>, %arg19: memref<1x32xf32, #tpu.memory_space<vmem>>, %arg20: memref<1x32xf32, #tpu.memory_space<vmem>>, %arg21: memref<1x8x32xf32, #tpu.memory_space<vmem>>, %arg22: memref<8x32xbf16, #tpu.memory_space<vmem>>, %arg23: memref<8x32xbf16, #tpu.memory_space<vmem>>) attributes {dimension_semantics = [#tpu.dimension_semantics<parallel>, #tpu.dimension_semantics<arbitrary>], iteration_bounds = array<i64: 2, 1>, scalar_prefetch = 0 : i64, scratch_operands = 2 : i64, tpu.core_type = #tpu.core_type<tc>, window_params = [{transform_indices = @transform_0, window_bounds = array<i64: 1, 8, 32>}, {transform_indices = @transform_1, window_bounds = array<i64: 1, 8, 32>}, {transform_indices = @transform_2, window_bounds = array<i64: 1, 8, 8>}, {pipeline_mode = #tpu.pipeline_mode<synchronous>, transform_indices = @transform_3, window_bounds = array<i64: 32, 32>}, {pipeline_mode = #tpu.pipeline_mode<synchronous>, transform_indices = @transform_4, window_bounds = array<i64: 1, 32>}, {pipeline_mode = #tpu.pipeline_mode<synchronous>, transform_indices = @transform_5, window_bounds = array<i64: 32, 32>}, {pipeline_mode = #tpu.pipeline_mode<synchronous>, transform_indices = @transform_6, window_bounds = array<i64: 1, 32>}, {pipeline_mode = #tpu.pipeline_mode<synchronous>, transform_indices = @transform_7, window_bounds = array<i64: 32, 32>}, {pipeline_mode = #tpu.pipeline_mode<synchronous>, transform_indices = @transform_8, window_bounds = array<i64: 1, 32>}, {pipeline_mode = #tpu.pipeline_mode<synchronous>, transform_indices = @transform_9, window_bounds = array<i64: 32, 32>}, {pipeline_mode = #tpu.pipeline_mode<synchronous>, transform_indices = @transform_10, window_bounds = array<i64: 1, 32>}, {pipeline_mode = #tpu.pipeline_mode<synchronous>, transform_indices = @transform_11, window_bounds = array<i64: 1, 32>}, {pipeline_mode = #tpu.pipeline_mode<synchronous>, transform_indices = @transform_12, window_bounds = array<i64: 1, 32>}, {pipeline_mode = #tpu.pipeline_mode<synchronous>, transform_indices = @transform_13, window_bounds = array<i64: 32, 64>}, {pipeline_mode = #tpu.pipeline_mode<synchronous>, transform_indices = @transform_14, window_bounds = array<i64: 1, 64>}, {pipeline_mode = #tpu.pipeline_mode<synchronous>, transform_indices = @transform_15, window_bounds = array<i64: 64, 32>}, {pipeline_mode = #tpu.pipeline_mode<synchronous>, transform_indices = @transform_16, window_bounds = array<i64: 1, 32>}, {pipeline_mode = #tpu.pipeline_mode<synchronous>, transform_indices = @transform_17, window_bounds = array<i64: 1, 32>}, {pipeline_mode = #tpu.pipeline_mode<synchronous>, transform_indices = @transform_18, window_bounds = array<i64: 1, 32>}, {transform_indices = @transform_19, window_bounds = array<i64: 1, 8, 32>}]} {
    %c0_i32 = arith.constant 0 : i32
    %0 = arith.cmpi eq, %arg1, %c0_i32 : i32
    %1 = arith.extui %0 : i1 to i32
    %c0_i32_0 = arith.constant 0 : i32
    %2 = arith.cmpi ne, %1, %c0_i32_0 : i32
    scf.if %2 {
      %c0_78 = arith.constant 0 : index
      %c0_79 = arith.constant 0 : index
      %c0_80 = arith.constant 0 : index
      %180 = vector.load %arg3[%c0_78, %c0_79, %c0_80] : memref<1x8x32xbf16, #tpu.memory_space<vmem>>, vector<1x8x32xbf16>
      %181 = vector.shape_cast %180 : vector<1x8x32xbf16> to vector<8x32xbf16>
      %c0_81 = arith.constant 0 : index
      %c0_82 = arith.constant 0 : index
      %182 = vector.load %arg7[%c0_81, %c0_82] : memref<32x32xbf16, #tpu.memory_space<vmem>>, vector<32x32xbf16>
      %cst_83 = arith.constant dense<0.000000e+00> : vector<8x32xf32>
      %183 = tpu.matmul %181, %182, %cst_83 {dimension_numbers = #tpu.dot_dimension_numbers<[1], [0], [0], [1], [0, 0, 1, 1], [], []>} : vector<8x32xbf16>, vector<32x32xbf16>, vector<8x32xf32> -> vector<8x32xf32>
      %c0_84 = arith.constant 0 : index
      %c0_85 = arith.constant 0 : index
      %184 = vector.load %arg8[%c0_84, %c0_85] : memref<1x32xf32, #tpu.memory_space<vmem>>, vector<1x32xf32>
      %185 = vector.broadcast %184 : vector<1x32xf32> to vector<8x32xf32>
      %186 = arith.addf %183, %185 : vector<8x32xf32>
      %187 = arith.truncf %186 : vector<8x32xf32> to vector<8x32xbf16>
      %c0_86 = arith.constant 0 : index
      %c0_87 = arith.constant 0 : index
      %188 = vector.load %arg22[%c0_86, %c0_87] : memref<8x32xbf16, #tpu.memory_space<vmem>>, vector<8x32xbf16>
      tpu.vector_store %arg22[%c0_86, %c0_87], %187 {strides = array<i32>} : memref<8x32xbf16, #tpu.memory_space<vmem>>, vector<8x32xbf16>,
      %c0_88 = arith.constant 0 : index
      %c0_89 = arith.constant 0 : index
      %189 = vector.load %arg9[%c0_88, %c0_89] : memref<32x32xbf16, #tpu.memory_space<vmem>>, vector<32x32xbf16>
      %cst_90 = arith.constant dense<0.000000e+00> : vector<8x32xf32>
      %190 = tpu.matmul %181, %189, %cst_90 {dimension_numbers = #tpu.dot_dimension_numbers<[1], [0], [0], [1], [0, 0, 1, 1], [], []>} : vector<8x32xbf16>, vector<32x32xbf16>, vector<8x32xf32> -> vector<8x32xf32>
      %c0_91 = arith.constant 0 : index
      %c0_92 = arith.constant 0 : index
      %191 = vector.load %arg10[%c0_91, %c0_92] : memref<1x32xf32, #tpu.memory_space<vmem>>, vector<1x32xf32>
      %192 = vector.broadcast %191 : vector<1x32xf32> to vector<8x32xf32>
      %193 = arith.addf %190, %192 : vector<8x32xf32>
      %194 = arith.truncf %193 : vector<8x32xf32> to vector<8x32xbf16>
      %c0_93 = arith.constant 0 : index
      %c0_94 = arith.constant 0 : index
      %195 = vector.load %arg23[%c0_93, %c0_94] : memref<8x32xbf16, #tpu.memory_space<vmem>>, vector<8x32xbf16>
      tpu.vector_store %arg23[%c0_93, %c0_94], %194 {strides = array<i32>} : memref<8x32xbf16, #tpu.memory_space<vmem>>, vector<8x32xbf16>,
    } else {
    }
    %c0 = arith.constant 0 : index
    %c0_1 = arith.constant 0 : index
    %c0_2 = arith.constant 0 : index
    %3 = vector.load %arg2[%c0, %c0_1, %c0_2] : memref<1x8x32xf32, #tpu.memory_space<vmem>>, vector<1x8x32xf32>
    %4 = vector.shape_cast %3 : vector<1x8x32xf32> to vector<8x32xf32>
    %c0_3 = arith.constant 0 : index
    %c0_4 = arith.constant 0 : index
    %c0_5 = arith.constant 0 : index
    %5 = vector.load %arg4[%c0_3, %c0_4, %c0_5] : memref<1x8x8xbf16, #tpu.memory_space<vmem>>, vector<1x8x8xbf16>
    %6 = vector.shape_cast %5 : vector<1x8x8xbf16> to vector<8x8xbf16>
    %7 = arith.extf %6 : vector<8x8xbf16> to vector<8x8xf32>
    %8 = arith.truncf %4 : vector<8x32xf32> to vector<8x32xbf16>
    %c0_6 = arith.constant 0 : index
    %c0_7 = arith.constant 0 : index
    %9 = vector.load %arg5[%c0_6, %c0_7] : memref<32x32xbf16, #tpu.memory_space<vmem>>, vector<32x32xbf16>
    %cst = arith.constant dense<0.000000e+00> : vector<8x32xf32>
    %10 = tpu.matmul %8, %9, %cst {dimension_numbers = #tpu.dot_dimension_numbers<[1], [0], [0], [1], [0, 0, 1, 1], [], []>} : vector<8x32xbf16>, vector<32x32xbf16>, vector<8x32xf32> -> vector<8x32xf32>
    %c0_8 = arith.constant 0 : index
    %c0_9 = arith.constant 0 : index
    %11 = vector.load %arg6[%c0_8, %c0_9] : memref<1x32xf32, #tpu.memory_space<vmem>>, vector<1x32xf32>
    %12 = vector.broadcast %11 : vector<1x32xf32> to vector<8x32xf32>
    %13 = arith.addf %10, %12 : vector<8x32xf32>
    %14 = arith.truncf %13 : vector<8x32xf32> to vector<8x32xbf16>
    %c0_10 = arith.constant 0 : index
    %c0_11 = arith.constant 0 : index
    %15 = vector.load %arg22[%c0_10, %c0_11] : memref<8x32xbf16, #tpu.memory_space<vmem>>, vector<8x32xbf16>
    %c0_12 = arith.constant 0 : index
    %c0_13 = arith.constant 0 : index
    %16 = vector.load %arg23[%c0_12, %c0_13] : memref<8x32xbf16, #tpu.memory_space<vmem>>, vector<8x32xbf16>
    %cst_14 = arith.constant 0.000000e+00 : f32
    %17 = vector.broadcast %cst_14 : f32 to vector<8x32xf32>
    %18 = vector.extract_strided_slice %14 {offsets = [0, 0], sizes = [8, 8], strides = [1, 1]} : vector<8x32xbf16> to vector<8x8xbf16>
    %19 = vector.extract_strided_slice %15 {offsets = [0, 0], sizes = [8, 8], strides = [1, 1]} : vector<8x32xbf16> to vector<8x8xbf16>
    %20 = vector.extract_strided_slice %16 {offsets = [0, 0], sizes = [8, 8], strides = [1, 1]} : vector<8x32xbf16> to vector<8x8xbf16>
    %cst_15 = arith.constant dense<0.000000e+00> : vector<8x8xf32>
    %21 = tpu.matmul %18, %19, %cst_15 {dimension_numbers = #tpu.dot_dimension_numbers<[1], [1], [0], [0], [0, 0, 1, 0], [], []>} : vector<8x8xbf16>, vector<8x8xbf16>, vector<8x8xf32> -> vector<8x8xf32>
    %cst_16 = arith.constant 0.353553385 : f32
    %22 = vector.broadcast %cst_16 : f32 to vector<8x8xf32>
    %23 = arith.mulf %21, %22 : vector<8x8xf32>
    %24 = arith.addf %23, %7 : vector<8x8xf32>
    %cst_17 = arith.constant dense<0xFF800000> : vector<8xf32>
    %25 = vector.multi_reduction <maximumf>, %24, %cst_17 [1] : vector<8x8xf32> to vector<8xf32>
    %26 = vector.shape_cast %25 : vector<8xf32> to vector<8x1xf32>
    %27 = vector.broadcast %26 : vector<8x1xf32> to vector<8x8xf32>
    %28 = arith.subf %24, %27 : vector<8x8xf32>
    %29 = math.exp %28 : vector<8x8xf32>
    %cst_18 = arith.constant dense<0.000000e+00> : vector<8xf32>
    %30 = vector.multi_reduction <add>, %29, %cst_18 [1] : vector<8x8xf32> to vector<8xf32>
    %31 = vector.shape_cast %30 : vector<8xf32> to vector<8x1xf32>
    %32 = tpu.reciprocal %31 {approx = true} : vector<8x1xf32> -> vector<8x1xf32>
    %33 = vector.broadcast %32 : vector<8x1xf32> to vector<8x8xf32>
    %34 = arith.mulf %29, %33 : vector<8x8xf32>
    %35 = arith.truncf %34 : vector<8x8xf32> to vector<8x8xbf16>
    %cst_19 = arith.constant dense<0.000000e+00> : vector<8x8xf32>
    %36 = tpu.matmul %35, %20, %cst_19 {dimension_numbers = #tpu.dot_dimension_numbers<[1], [0], [0], [1], [0, 0, 1, 1], [], []>} : vector<8x8xbf16>, vector<8x8xbf16>, vector<8x8xf32> -> vector<8x8xf32>
    %37 = arith.truncf %36 : vector<8x8xf32> to vector<8x8xbf16>
    %c0_20 = arith.constant 0 : index
    %c0_21 = arith.constant 0 : index
    %38 = vector.load %arg11[%c0_20, %c0_21] : memref<32x32xbf16, #tpu.memory_space<vmem>>, vector<8x32xbf16>
    %cst_22 = arith.constant dense<0.000000e+00> : vector<8x32xf32>
    %39 = tpu.matmul %37, %38, %cst_22 {dimension_numbers = #tpu.dot_dimension_numbers<[1], [0], [0], [1], [0, 0, 1, 1], [], []>} : vector<8x8xbf16>, vector<8x32xbf16>, vector<8x32xf32> -> vector<8x32xf32>
    %40 = arith.addf %17, %39 : vector<8x32xf32>
    %41 = vector.extract_strided_slice %14 {offsets = [0, 8], sizes = [8, 8], strides = [1, 1]} : vector<8x32xbf16> to vector<8x8xbf16>
    %42 = vector.extract_strided_slice %15 {offsets = [0, 8], sizes = [8, 8], strides = [1, 1]} : vector<8x32xbf16> to vector<8x8xbf16>
    %43 = vector.extract_strided_slice %16 {offsets = [0, 8], sizes = [8, 8], strides = [1, 1]} : vector<8x32xbf16> to vector<8x8xbf16>
    %cst_23 = arith.constant dense<0.000000e+00> : vector<8x8xf32>
    %44 = tpu.matmul %41, %42, %cst_23 {dimension_numbers = #tpu.dot_dimension_numbers<[1], [1], [0], [0], [0, 0, 1, 0], [], []>} : vector<8x8xbf16>, vector<8x8xbf16>, vector<8x8xf32> -> vector<8x8xf32>
    %cst_24 = arith.constant 0.353553385 : f32
    %45 = vector.broadcast %cst_24 : f32 to vector<8x8xf32>
    %46 = arith.mulf %44, %45 : vector<8x8xf32>
    %47 = arith.addf %46, %7 : vector<8x8xf32>
    %cst_25 = arith.constant dense<0xFF800000> : vector<8xf32>
    %48 = vector.multi_reduction <maximumf>, %47, %cst_25 [1] : vector<8x8xf32> to vector<8xf32>
    %49 = vector.shape_cast %48 : vector<8xf32> to vector<8x1xf32>
    %50 = vector.broadcast %49 : vector<8x1xf32> to vector<8x8xf32>
    %51 = arith.subf %47, %50 : vector<8x8xf32>
    %52 = math.exp %51 : vector<8x8xf32>
    %cst_26 = arith.constant dense<0.000000e+00> : vector<8xf32>
    %53 = vector.multi_reduction <add>, %52, %cst_26 [1] : vector<8x8xf32> to vector<8xf32>
    %54 = vector.shape_cast %53 : vector<8xf32> to vector<8x1xf32>
    %55 = tpu.reciprocal %54 {approx = true} : vector<8x1xf32> -> vector<8x1xf32>
    %56 = vector.broadcast %55 : vector<8x1xf32> to vector<8x8xf32>
    %57 = arith.mulf %52, %56 : vector<8x8xf32>
    %58 = arith.truncf %57 : vector<8x8xf32> to vector<8x8xbf16>
    %cst_27 = arith.constant dense<0.000000e+00> : vector<8x8xf32>
    %59 = tpu.matmul %58, %43, %cst_27 {dimension_numbers = #tpu.dot_dimension_numbers<[1], [0], [0], [1], [0, 0, 1, 1], [], []>} : vector<8x8xbf16>, vector<8x8xbf16>, vector<8x8xf32> -> vector<8x8xf32>
    %60 = arith.truncf %59 : vector<8x8xf32> to vector<8x8xbf16>
    %c8 = arith.constant 8 : index
    %c0_28 = arith.constant 0 : index
    %61 = vector.load %arg11[%c8, %c0_28] : memref<32x32xbf16, #tpu.memory_space<vmem>>, vector<8x32xbf16>
    %cst_29 = arith.constant dense<0.000000e+00> : vector<8x32xf32>
    %62 = tpu.matmul %60, %61, %cst_29 {dimension_numbers = #tpu.dot_dimension_numbers<[1], [0], [0], [1], [0, 0, 1, 1], [], []>} : vector<8x8xbf16>, vector<8x32xbf16>, vector<8x32xf32> -> vector<8x32xf32>
    %63 = arith.addf %40, %62 : vector<8x32xf32>
    %64 = vector.extract_strided_slice %14 {offsets = [0, 16], sizes = [8, 8], strides = [1, 1]} : vector<8x32xbf16> to vector<8x8xbf16>
    %65 = vector.extract_strided_slice %15 {offsets = [0, 16], sizes = [8, 8], strides = [1, 1]} : vector<8x32xbf16> to vector<8x8xbf16>
    %66 = vector.extract_strided_slice %16 {offsets = [0, 16], sizes = [8, 8], strides = [1, 1]} : vector<8x32xbf16> to vector<8x8xbf16>
    %cst_30 = arith.constant dense<0.000000e+00> : vector<8x8xf32>
    %67 = tpu.matmul %64, %65, %cst_30 {dimension_numbers = #tpu.dot_dimension_numbers<[1], [1], [0], [0], [0, 0, 1, 0], [], []>} : vector<8x8xbf16>, vector<8x8xbf16>, vector<8x8xf32> -> vector<8x8xf32>
    %cst_31 = arith.constant 0.353553385 : f32
    %68 = vector.broadcast %cst_31 : f32 to vector<8x8xf32>
    %69 = arith.mulf %67, %68 : vector<8x8xf32>
    %70 = arith.addf %69, %7 : vector<8x8xf32>
    %cst_32 = arith.constant dense<0xFF800000> : vector<8xf32>
    %71 = vector.multi_reduction <maximumf>, %70, %cst_32 [1] : vector<8x8xf32> to vector<8xf32>
    %72 = vector.shape_cast %71 : vector<8xf32> to vector<8x1xf32>
    %73 = vector.broadcast %72 : vector<8x1xf32> to vector<8x8xf32>
    %74 = arith.subf %70, %73 : vector<8x8xf32>
    %75 = math.exp %74 : vector<8x8xf32>
    %cst_33 = arith.constant dense<0.000000e+00> : vector<8xf32>
    %76 = vector.multi_reduction <add>, %75, %cst_33 [1] : vector<8x8xf32> to vector<8xf32>
    %77 = vector.shape_cast %76 : vector<8xf32> to vector<8x1xf32>
    %78 = tpu.reciprocal %77 {approx = true} : vector<8x1xf32> -> vector<8x1xf32>
    %79 = vector.broadcast %78 : vector<8x1xf32> to vector<8x8xf32>
    %80 = arith.mulf %75, %79 : vector<8x8xf32>
    %81 = arith.truncf %80 : vector<8x8xf32> to vector<8x8xbf16>
    %cst_34 = arith.constant dense<0.000000e+00> : vector<8x8xf32>
    %82 = tpu.matmul %81, %66, %cst_34 {dimension_numbers = #tpu.dot_dimension_numbers<[1], [0], [0], [1], [0, 0, 1, 1], [], []>} : vector<8x8xbf16>, vector<8x8xbf16>, vector<8x8xf32> -> vector<8x8xf32>
    %83 = arith.truncf %82 : vector<8x8xf32> to vector<8x8xbf16>
    %c16 = arith.constant 16 : index
    %c0_35 = arith.constant 0 : index
    %84 = vector.load %arg11[%c16, %c0_35] : memref<32x32xbf16, #tpu.memory_space<vmem>>, vector<8x32xbf16>
    %cst_36 = arith.constant dense<0.000000e+00> : vector<8x32xf32>
    %85 = tpu.matmul %83, %84, %cst_36 {dimension_numbers = #tpu.dot_dimension_numbers<[1], [0], [0], [1], [0, 0, 1, 1], [], []>} : vector<8x8xbf16>, vector<8x32xbf16>, vector<8x32xf32> -> vector<8x32xf32>
    %86 = arith.addf %63, %85 : vector<8x32xf32>
    %87 = vector.extract_strided_slice %14 {offsets = [0, 24], sizes = [8, 8], strides = [1, 1]} : vector<8x32xbf16> to vector<8x8xbf16>
    %88 = vector.extract_strided_slice %15 {offsets = [0, 24], sizes = [8, 8], strides = [1, 1]} : vector<8x32xbf16> to vector<8x8xbf16>
    %89 = vector.extract_strided_slice %16 {offsets = [0, 24], sizes = [8, 8], strides = [1, 1]} : vector<8x32xbf16> to vector<8x8xbf16>
    %cst_37 = arith.constant dense<0.000000e+00> : vector<8x8xf32>
    %90 = tpu.matmul %87, %88, %cst_37 {dimension_numbers = #tpu.dot_dimension_numbers<[1], [1], [0], [0], [0, 0, 1, 0], [], []>} : vector<8x8xbf16>, vector<8x8xbf16>, vector<8x8xf32> -> vector<8x8xf32>
    %cst_38 = arith.constant 0.353553385 : f32
    %91 = vector.broadcast %cst_38 : f32 to vector<8x8xf32>
    %92 = arith.mulf %90, %91 : vector<8x8xf32>
    %93 = arith.addf %92, %7 : vector<8x8xf32>
    %cst_39 = arith.constant dense<0xFF800000> : vector<8xf32>
    %94 = vector.multi_reduction <maximumf>, %93, %cst_39 [1] : vector<8x8xf32> to vector<8xf32>
    %95 = vector.shape_cast %94 : vector<8xf32> to vector<8x1xf32>
    %96 = vector.broadcast %95 : vector<8x1xf32> to vector<8x8xf32>
    %97 = arith.subf %93, %96 : vector<8x8xf32>
    %98 = math.exp %97 : vector<8x8xf32>
    %cst_40 = arith.constant dense<0.000000e+00> : vector<8xf32>
    %99 = vector.multi_reduction <add>, %98, %cst_40 [1] : vector<8x8xf32> to vector<8xf32>
    %100 = vector.shape_cast %99 : vector<8xf32> to vector<8x1xf32>
    %101 = tpu.reciprocal %100 {approx = true} : vector<8x1xf32> -> vector<8x1xf32>
    %102 = vector.broadcast %101 : vector<8x1xf32> to vector<8x8xf32>
    %103 = arith.mulf %98, %102 : vector<8x8xf32>
    %104 = arith.truncf %103 : vector<8x8xf32> to vector<8x8xbf16>
    %cst_41 = arith.constant dense<0.000000e+00> : vector<8x8xf32>
    %105 = tpu.matmul %104, %89, %cst_41 {dimension_numbers = #tpu.dot_dimension_numbers<[1], [0], [0], [1], [0, 0, 1, 1], [], []>} : vector<8x8xbf16>, vector<8x8xbf16>, vector<8x8xf32> -> vector<8x8xf32>
    %106 = arith.truncf %105 : vector<8x8xf32> to vector<8x8xbf16>
    %c24 = arith.constant 24 : index
    %c0_42 = arith.constant 0 : index
    %107 = vector.load %arg11[%c24, %c0_42] : memref<32x32xbf16, #tpu.memory_space<vmem>>, vector<8x32xbf16>
    %cst_43 = arith.constant dense<0.000000e+00> : vector<8x32xf32>
    %108 = tpu.matmul %106, %107, %cst_43 {dimension_numbers = #tpu.dot_dimension_numbers<[1], [0], [0], [1], [0, 0, 1, 1], [], []>} : vector<8x8xbf16>, vector<8x32xbf16>, vector<8x32xf32> -> vector<8x32xf32>
    %109 = arith.addf %86, %108 : vector<8x32xf32>
    %c0_44 = arith.constant 0 : index
    %c0_45 = arith.constant 0 : index
    %110 = vector.load %arg12[%c0_44, %c0_45] : memref<1x32xf32, #tpu.memory_space<vmem>>, vector<1x32xf32>
    %111 = vector.broadcast %110 : vector<1x32xf32> to vector<8x32xf32>
    %112 = arith.addf %109, %111 : vector<8x32xf32>
    %113 = arith.addf %112, %4 : vector<8x32xf32>
    %c0_46 = arith.constant 0 : index
    %c0_47 = arith.constant 0 : index
    %114 = vector.load %arg13[%c0_46, %c0_47] : memref<1x32xf32, #tpu.memory_space<vmem>>, vector<1x32xf32>
    %c0_48 = arith.constant 0 : index
    %c0_49 = arith.constant 0 : index
    %115 = vector.load %arg14[%c0_48, %c0_49] : memref<1x32xf32, #tpu.memory_space<vmem>>, vector<1x32xf32>
    %cst_50 = arith.constant dense<0.000000e+00> : vector<8xf32>
    %116 = vector.multi_reduction <add>, %113, %cst_50 [1] : vector<8x32xf32> to vector<8xf32>
    %117 = vector.shape_cast %116 : vector<8xf32> to vector<8x1xf32>
    %cst_51 = arith.constant 3.200000e+01 : f32
    %118 = vector.broadcast %cst_51 : f32 to vector<8x1xf32>
    %119 = arith.divf %117, %118 : vector<8x1xf32>
    %120 = vector.broadcast %119 : vector<8x1xf32> to vector<8x32xf32>
    %121 = arith.subf %113, %120 : vector<8x32xf32>
    %122 = arith.mulf %121, %121 : vector<8x32xf32>
    %cst_52 = arith.constant dense<0.000000e+00> : vector<8xf32>
    %123 = vector.multi_reduction <add>, %122, %cst_52 [1] : vector<8x32xf32> to vector<8xf32>
    %124 = vector.shape_cast %123 : vector<8xf32> to vector<8x1xf32>
    %cst_53 = arith.constant 3.200000e+01 : f32
    %125 = vector.broadcast %cst_53 : f32 to vector<8x1xf32>
    %126 = arith.divf %124, %125 : vector<8x1xf32>
    %127 = vector.broadcast %119 : vector<8x1xf32> to vector<8x32xf32>
    %128 = arith.subf %113, %127 : vector<8x32xf32>
    %cst_54 = arith.constant 9.99999997E-7 : f32
    %129 = vector.broadcast %cst_54 : f32 to vector<8x1xf32>
    %130 = arith.addf %126, %129 : vector<8x1xf32>
    %131 = math.rsqrt %130 : vector<8x1xf32>
    %132 = vector.broadcast %131 : vector<8x1xf32> to vector<8x32xf32>
    %133 = arith.mulf %128, %132 : vector<8x32xf32>
    %134 = vector.broadcast %114 : vector<1x32xf32> to vector<8x32xf32>
    %135 = arith.mulf %133, %134 : vector<8x32xf32>
    %136 = vector.broadcast %115 : vector<1x32xf32> to vector<8x32xf32>
    %137 = arith.addf %135, %136 : vector<8x32xf32>
    %138 = arith.truncf %137 : vector<8x32xf32> to vector<8x32xbf16>
    %c0_55 = arith.constant 0 : index
    %c0_56 = arith.constant 0 : index
    %139 = vector.load %arg15[%c0_55, %c0_56] : memref<32x64xbf16, #tpu.memory_space<vmem>>, vector<32x64xbf16>
    %cst_57 = arith.constant dense<0.000000e+00> : vector<8x64xf32>
    %140 = tpu.matmul %138, %139, %cst_57 {dimension_numbers = #tpu.dot_dimension_numbers<[1], [0], [0], [1], [0, 0, 1, 1], [], []>} : vector<8x32xbf16>, vector<32x64xbf16>, vector<8x64xf32> -> vector<8x64xf32>
    %c0_58 = arith.constant 0 : index
    %c0_59 = arith.constant 0 : index
    %141 = vector.load %arg16[%c0_58, %c0_59] : memref<1x64xf32, #tpu.memory_space<vmem>>, vector<1x64xf32>
    %142 = vector.broadcast %141 : vector<1x64xf32> to vector<8x64xf32>
    %143 = arith.addf %140, %142 : vector<8x64xf32>
    %cst_60 = arith.constant 0.000000e+00 : f32
    %144 = vector.broadcast %cst_60 : f32 to vector<8x64xf32>
    %145 = arith.maximumf %143, %144 : vector<8x64xf32>
    %146 = arith.truncf %145 : vector<8x64xf32> to vector<8x64xbf16>
    %c0_61 = arith.constant 0 : index
    %c0_62 = arith.constant 0 : index
    %147 = vector.load %arg17[%c0_61, %c0_62] : memref<64x32xbf16, #tpu.memory_space<vmem>>, vector<64x32xbf16>
    %cst_63 = arith.constant dense<0.000000e+00> : vector<8x32xf32>
    %148 = tpu.matmul %146, %147, %cst_63 {dimension_numbers = #tpu.dot_dimension_numbers<[1], [0], [0], [1], [0, 0, 1, 1], [], []>} : vector<8x64xbf16>, vector<64x32xbf16>, vector<8x32xf32> -> vector<8x32xf32>
    %c0_64 = arith.constant 0 : index
    %c0_65 = arith.constant 0 : index
    %149 = vector.load %arg18[%c0_64, %c0_65] : memref<1x32xf32, #tpu.memory_space<vmem>>, vector<1x32xf32>
    %150 = vector.broadcast %149 : vector<1x32xf32> to vector<8x32xf32>
    %151 = arith.addf %148, %150 : vector<8x32xf32>
    %152 = arith.addf %151, %137 : vector<8x32xf32>
    %c0_66 = arith.constant 0 : index
    %c0_67 = arith.constant 0 : index
    %153 = vector.load %arg19[%c0_66, %c0_67] : memref<1x32xf32, #tpu.memory_space<vmem>>, vector<1x32xf32>
    %c0_68 = arith.constant 0 : index
    %c0_69 = arith.constant 0 : index
    %154 = vector.load %arg20[%c0_68, %c0_69] : memref<1x32xf32, #tpu.memory_space<vmem>>, vector<1x32xf32>
    %cst_70 = arith.constant dense<0.000000e+00> : vector<8xf32>
    %155 = vector.multi_reduction <add>, %152, %cst_70 [1] : vector<8x32xf32> to vector<8xf32>
    %156 = vector.shape_cast %155 : vector<8xf32> to vector<8x1xf32>
    %cst_71 = arith.constant 3.200000e+01 : f32
    %157 = vector.broadcast %cst_71 : f32 to vector<8x1xf32>
    %158 = arith.divf %156, %157 : vector<8x1xf32>
    %159 = vector.broadcast %158 : vector<8x1xf32> to vector<8x32xf32>
    %160 = arith.subf %152, %159 : vector<8x32xf32>
    %161 = arith.mulf %160, %160 : vector<8x32xf32>
    %cst_72 = arith.constant dense<0.000000e+00> : vector<8xf32>
    %162 = vector.multi_reduction <add>, %161, %cst_72 [1] : vector<8x32xf32> to vector<8xf32>
    %163 = vector.shape_cast %162 : vector<8xf32> to vector<8x1xf32>
    %cst_73 = arith.constant 3.200000e+01 : f32
    %164 = vector.broadcast %cst_73 : f32 to vector<8x1xf32>
    %165 = arith.divf %163, %164 : vector<8x1xf32>
    %166 = vector.broadcast %158 : vector<8x1xf32> to vector<8x32xf32>
    %167 = arith.subf %152, %166 : vector<8x32xf32>
    %cst_74 = arith.constant 9.99999997E-7 : f32
    %168 = vector.broadcast %cst_74 : f32 to vector<8x1xf32>
    %169 = arith.addf %165, %168 : vector<8x1xf32>
    %170 = math.rsqrt %169 : vector<8x1xf32>
    %171 = vector.broadcast %170 : vector<8x1xf32> to vector<8x32xf32>
    %172 = arith.mulf %167, %171 : vector<8x32xf32>
    %173 = vector.broadcast %153 : vector<1x32xf32> to vector<8x32xf32>
    %174 = arith.mulf %172, %173 : vector<8x32xf32>
    %175 = vector.broadcast %154 : vector<1x32xf32> to vector<8x32xf32>
    %176 = arith.addf %174, %175 : vector<8x32xf32>
    %c0_75 = arith.constant 0 : index
    %c0_76 = arith.constant 0 : index
    %c0_77 = arith.constant 0 : index
    %177 = vector.load %arg21[%c0_75, %c0_76, %c0_77] : memref<1x8x32xf32, #tpu.memory_space<vmem>>, vector<1x8x32xf32>
    %178 = vector.shape_cast %177 : vector<1x8x32xf32> to vector<8x32xf32>
    %179 = vector.shape_cast %176 : vector<8x32xf32> to vector<1x8x32xf32>
    tpu.vector_store %arg21[%c0_75, %c0_76, %c0_77], %179 {strides = array<i32>} : memref<1x8x32xf32, #tpu.memory_space<vmem>>, vector<1x8x32xf32>,
    return
  }
  func.func @transform_0(%arg0: i32, %arg1: i32) -> (i32, i32, i32) {
    %c0_i32 = arith.constant 0 : i32
    %c0_i32_0 = arith.constant 0 : i32
    return %arg0, %arg1, %c0_i32 : i32, i32, i32
  }
  func.func @transform_1(%arg0: i32, %arg1: i32) -> (i32, i32, i32) {
    %c0_i32 = arith.constant 0 : i32
    %c0_i32_0 = arith.constant 0 : i32
    %c0_i32_1 = arith.constant 0 : i32
    return %arg0, %c0_i32, %c0_i32_0 : i32, i32, i32
  }
  func.func @transform_2(%arg0: i32, %arg1: i32) -> (i32, i32, i32) {
    %c0_i32 = arith.constant 0 : i32
    %c0_i32_0 = arith.constant 0 : i32
    return %arg0, %arg1, %c0_i32 : i32, i32, i32
  }
  func.func @transform_3(%arg0: i32, %arg1: i32) -> (i32, i32) {
    %c0_i32 = arith.constant 0 : i32
    %c0_i32_0 = arith.constant 0 : i32
    %c0_i32_1 = arith.constant 0 : i32
    return %c0_i32, %c0_i32_0 : i32, i32
  }
  func.func @transform_4(%arg0: i32, %arg1: i32) -> (i32, i32) {
    %c0_i32 = arith.constant 0 : i32
    %c0_i32_0 = arith.constant 0 : i32
    %c0_i32_1 = arith.constant 0 : i32
    return %c0_i32, %c0_i32_0 : i32, i32
  }
  func.func @transform_5(%arg0: i32, %arg1: i32) -> (i32, i32) {
    %c0_i32 = arith.constant 0 : i32
    %c0_i32_0 = arith.constant 0 : i32
    %c0_i32_1 = arith.constant 0 : i32
    return %c0_i32, %c0_i32_0 : i32, i32
  }
  func.func @transform_6(%arg0: i32, %arg1: i32) -> (i32, i32) {
    %c0_i32 = arith.constant 0 : i32
    %c0_i32_0 = arith.constant 0 : i32
    %c0_i32_1 = arith.constant 0 : i32
    return %c0_i32, %c0_i32_0 : i32, i32
  }
  func.func @transform_7(%arg0: i32, %arg1: i32) -> (i32, i32) {
    %c0_i32 = arith.constant 0 : i32
    %c0_i32_0 = arith.constant 0 : i32
    %c0_i32_1 = arith.constant 0 : i32
    return %c0_i32, %c0_i32_0 : i32, i32
  }
  func.func @transform_8(%arg0: i32, %arg1: i32) -> (i32, i32) {
    %c0_i32 = arith.constant 0 : i32
    %c0_i32_0 = arith.constant 0 : i32
    %c0_i32_1 = arith.constant 0 : i32
    return %c0_i32, %c0_i32_0 : i32, i32
  }
  func.func @transform_9(%arg0: i32, %arg1: i32) -> (i32, i32) {
    %c0_i32 = arith.constant 0 : i32
    %c0_i32_0 = arith.constant 0 : i32
    %c0_i32_1 = arith.constant 0 : i32
    return %c0_i32, %c0_i32_0 : i32, i32
  }
  func.func @transform_10(%arg0: i32, %arg1: i32) -> (i32, i32) {
    %c0_i32 = arith.constant 0 : i32
    %c0_i32_0 = arith.constant 0 : i32
    %c0_i32_1 = arith.constant 0 : i32
    return %c0_i32, %c0_i32_0 : i32, i32
  }
  func.func @transform_11(%arg0: i32, %arg1: i32) -> (i32, i32) {
    %c0_i32 = arith.constant 0 : i32
    %c0_i32_0 = arith.constant 0 : i32
    %c0_i32_1 = arith.constant 0 : i32
    return %c0_i32, %c0_i32_0 : i32, i32
  }
  func.func @transform_12(%arg0: i32, %arg1: i32) -> (i32, i32) {
    %c0_i32 = arith.constant 0 : i32
    %c0_i32_0 = arith.constant 0 : i32
    %c0_i32_1 = arith.constant 0 : i32
    return %c0_i32, %c0_i32_0 : i32, i32
  }
  func.func @transform_13(%arg0: i32, %arg1: i32) -> (i32, i32) {
    %c0_i32 = arith.constant 0 : i32
    %c0_i32_0 = arith.constant 0 : i32
    %c0_i32_1 = arith.constant 0 : i32
    return %c0_i32, %c0_i32_0 : i32, i32
  }
  func.func @transform_14(%arg0: i32, %arg1: i32) -> (i32, i32) {
    %c0_i32 = arith.constant 0 : i32
    %c0_i32_0 = arith.constant 0 : i32
    %c0_i32_1 = arith.constant 0 : i32
    return %c0_i32, %c0_i32_0 : i32, i32
  }
  func.func @transform_15(%arg0: i32, %arg1: i32) -> (i32, i32) {
    %c0_i32 = arith.constant 0 : i32
    %c0_i32_0 = arith.constant 0 : i32
    %c0_i32_1 = arith.constant 0 : i32
    return %c0_i32, %c0_i32_0 : i32, i32
  }
  func.func @transform_16(%arg0: i32, %arg1: i32) -> (i32, i32) {
    %c0_i32 = arith.constant 0 : i32
    %c0_i32_0 = arith.constant 0 : i32
    %c0_i32_1 = arith.constant 0 : i32
    return %c0_i32, %c0_i32_0 : i32, i32
  }
  func.func @transform_17(%arg0: i32, %arg1: i32) -> (i32, i32) {
    %c0_i32 = arith.constant 0 : i32
    %c0_i32_0 = arith.constant 0 : i32
    %c0_i32_1 = arith.constant 0 : i32
    return %c0_i32, %c0_i32_0 : i32, i32
  }
  func.func @transform_18(%arg0: i32, %arg1: i32) -> (i32, i32) {
    %c0_i32 = arith.constant 0 : i32
    %c0_i32_0 = arith.constant 0 : i32
    %c0_i32_1 = arith.constant 0 : i32
    return %c0_i32, %c0_i32_0 : i32, i32
  }
  func.func @transform_19(%arg0: i32, %arg1: i32) -> (i32, i32, i32) {
    %c0_i32 = arith.constant 0 : i32
    %c0_i32_0 = arith.constant 0 : i32
    return %arg0, %arg1, %c0_i32 : i32, i32, i32
  }
}

module attributes {stable_mosaic.version = 11 : i64} {
  func.func @kernel(%arg0: i32, %arg1: i32, %arg2: memref<1x8x32xf32, #tpu.memory_space<vmem>>, %arg3: memref<1x8x32xbf16, #tpu.memory_space<vmem>>, %arg4: memref<1x8x8xbf16, #tpu.memory_space<vmem>>, %arg5: memref<32x32xbf16, #tpu.memory_space<vmem>>, %arg6: memref<1x32xf32, #tpu.memory_space<vmem>>, %arg7: memref<32x32xbf16, #tpu.memory_space<vmem>>, %arg8: memref<1x32xf32, #tpu.memory_space<vmem>>, %arg9: memref<32x32xbf16, #tpu.memory_space<vmem>>, %arg10: memref<1x32xf32, #tpu.memory_space<vmem>>, %arg11: memref<32x32xbf16, #tpu.memory_space<vmem>>, %arg12: memref<1x32xf32, #tpu.memory_space<vmem>>, %arg13: memref<1x32xf32, #tpu.memory_space<vmem>>, %arg14: memref<1x32xf32, #tpu.memory_space<vmem>>, %arg15: memref<32x64xbf16, #tpu.memory_space<vmem>>, %arg16: memref<1x64xf32, #tpu.memory_space<vmem>>, %arg17: memref<64x32xbf16, #tpu.memory_space<vmem>>, %arg18: memref<1x32xf32, #tpu.memory_space<vmem>>, %arg19: memref<1x32xf32, #tpu.memory_space<vmem>>, %arg20: memref<1x32xf32, #tpu.memory_space<vmem>>, %arg21: memref<1x8x32xf32, #tpu.memory_space<vmem>>, %arg22: memref<8x32xbf16, #tpu.memory_space<vmem>>, %arg23: memref<8x32xbf16, #tpu.memory_space<vmem>>) attributes {dimension_semantics = [#tpu.dimension_semantics<parallel>, #tpu.dimension_semantics<arbitrary>], iteration_bounds = array<i64: 2, 1>, scalar_prefetch = 0 : i64, scratch_operands = 2 : i64, tpu.core_type = #tpu.core_type<tc>, window_params = [{transform_indices = @transform_0, window_bounds = array<i64: 1, 8, 32>}, {transform_indices = @transform_1, window_bounds = array<i64: 1, 8, 32>}, {transform_indices = @transform_2, window_bounds = array<i64: 1, 8, 8>}, {pipeline_mode = #tpu.pipeline_mode<synchronous>, transform_indices = @transform_3, window_bounds = array<i64: 32, 32>}, {pipeline_mode = #tpu.pipeline_mode<synchronous>, transform_indices = @transform_4, window_bounds = array<i64: 1, 32>}, {pipeline_mode = #tpu.pipeline_mode<synchronous>, transform_indices = @transform_5, window_bounds = array<i64: 32, 32>}, {pipeline_mode = #tpu.pipeline_mode<synchronous>, transform_indices = @transform_6, window_bounds = array<i64: 1, 32>}, {pipeline_mode = #tpu.pipeline_mode<synchronous>, transform_indices = @transform_7, window_bounds = array<i64: 32, 32>}, {pipeline_mode = #tpu.pipeline_mode<synchronous>, transform_indices = @transform_8, window_bounds = array<i64: 1, 32>}, {pipeline_mode = #tpu.pipeline_mode<synchronous>, transform_indices = @transform_9, window_bounds = array<i64: 32, 32>}, {pipeline_mode = #tpu.pipeline_mode<synchronous>, transform_indices = @transform_10, window_bounds = array<i64: 1, 32>}, {pipeline_mode = #tpu.pipeline_mode<synchronous>, transform_indices = @transform_11, window_bounds = array<i64: 1, 32>}, {pipeline_mode = #tpu.pipeline_mode<synchronous>, transform_indices = @transform_12, window_bounds = array<i64: 1, 32>}, {pipeline_mode = #tpu.pipeline_mode<synchronous>, transform_indices = @transform_13, window_bounds = array<i64: 32, 64>}, {pipeline_mode = #tpu.pipeline_mode<synchronous>, transform_indices = @transform_14, window_bounds = array<i64: 1, 64>}, {pipeline_mode = #tpu.pipeline_mode<synchronous>, transform_indices = @transform_15, window_bounds = array<i64: 64, 32>}, {pipeline_mode = #tpu.pipeline_mode<synchronous>, transform_indices = @transform_16, window_bounds = array<i64: 1, 32>}, {pipeline_mode = #tpu.pipeline_mode<synchronous>, transform_indices = @transform_17, window_bounds = array<i64: 1, 32>}, {pipeline_mode = #tpu.pipeline_mode<synchronous>, transform_indices = @transform_18, window_bounds = array<i64: 1, 32>}, {transform_indices = @transform_19, window_bounds = array<i64: 1, 8, 32>}]} {
    %c0_i32 = arith.constant 0 : i32
    %0 = arith.cmpi eq, %arg1, %c0_i32 : i32
    %1 = arith.extui %0 : i1 to i32
    %c0_i32_0 = arith.constant 0 : i32
    %2 = arith.cmpi ne, %1, %c0_i32_0 : i32
    scf.if %2 {
      %c0_78 = arith.constant 0 : index
      %c0_79 = arith.constant 0 : index
      %c0_80 = arith.constant 0 : index
      %180 = vector.load %arg3[%c0_78, %c0_79, %c0_80] : memref<1x8x32xbf16, #tpu.memory_space<vmem>>, vector<1x8x32xbf16>
      %181 = vector.shape_cast %180 : vector<1x8x32xbf16> to vector<8x32xbf16>
      %c0_81 = arith.constant 0 : index
      %c0_82 = arith.constant 0 : index
      %182 = vector.load %arg7[%c0_81, %c0_82] : memref<32x32xbf16, #tpu.memory_space<vmem>>, vector<32x32xbf16>
      %cst_83 = arith.constant dense<0.000000e+00> : vector<8x32xf32>
      %183 = tpu.matmul %181, %182, %cst_83 {dimension_numbers = #tpu.dot_dimension_numbers<[1], [0], [0], [1], [0, 0, 1, 1], [], []>} : vector<8x32xbf16>, vector<32x32xbf16>, vector<8x32xf32> -> vector<8x32xf32>
      %c0_84 = arith.constant 0 : index
      %c0_85 = arith.constant 0 : index
      %184 = vector.load %arg8[%c0_84, %c0_85] : memref<1x32xf32, #tpu.memory_space<vmem>>, vector<1x32xf32>
      %185 = vector.broadcast %184 : vector<1x32xf32> to vector<8x32xf32>
      %186 = arith.addf %183, %185 : vector<8x32xf32>
      %187 = arith.truncf %186 : vector<8x32xf32> to vector<8x32xbf16>
      %c0_86 = arith.constant 0 : index
      %c0_87 = arith.constant 0 : index
      %188 = vector.load %arg22[%c0_86, %c0_87] : memref<8x32xbf16, #tpu.memory_space<vmem>>, vector<8x32xbf16>
      tpu.vector_store %arg22[%c0_86, %c0_87], %187 {strides = array<i32>} : memref<8x32xbf16, #tpu.memory_space<vmem>>, vector<8x32xbf16>,
      %c0_88 = arith.constant 0 : index
      %c0_89 = arith.constant 0 : index
      %189 = vector.load %arg9[%c0_88, %c0_89] : memref<32x32xbf16, #tpu.memory_space<vmem>>, vector<32x32xbf16>
      %cst_90 = arith.constant dense<0.000000e+00> : vector<8x32xf32>
      %190 = tpu.matmul %181, %189, %cst_90 {dimension_numbers = #tpu.dot_dimension_numbers<[1], [0], [0], [1], [0, 0, 1, 1], [], []>} : vector<8x32xbf16>, vector<32x32xbf16>, vector<8x32xf32> -> vector<8x32xf32>
      %c0_91 = arith.constant 0 : index
      %c0_92 = arith.constant 0 : index
      %191 = vector.load %arg10[%c0_91, %c0_92] : memref<1x32xf32, #tpu.memory_space<vmem>>, vector<1x32xf32>
      %192 = vector.broadcast %191 : vector<1x32xf32> to vector<8x32xf32>
      %193 = arith.addf %190, %192 : vector<8x32xf32>
      %194 = arith.truncf %193 : vector<8x32xf32> to vector<8x32xbf16>
      %c0_93 = arith.constant 0 : index
      %c0_94 = arith.constant 0 : index
      %195 = vector.load %arg23[%c0_93, %c0_94] : memref<8x32xbf16, #tpu.memory_space<vmem>>, vector<8x32xbf16>
      tpu.vector_store %arg23[%c0_93, %c0_94], %194 {strides = array<i32>} : memref<8x32xbf16, #tpu.memory_space<vmem>>, vector<8x32xbf16>,
    } else {
    }
    %c0 = arith.constant 0 : index
    %c0_1 = arith.constant 0 : index
    %c0_2 = arith.constant 0 : index
    %3 = vector.load %arg2[%c0, %c0_1, %c0_2] : memref<1x8x32xf32, #tpu.memory_space<vmem>>, vector<1x8x32xf32>
    %4 = vector.shape_cast %3 : vector<1x8x32xf32> to vector<8x32xf32>
    %c0_3 = arith.constant 0 : index
    %c0_4 = arith.constant 0 : index
    %c0_5 = arith.constant 0 : index
    %5 = vector.load %arg4[%c0_3, %c0_4, %c0_5] : memref<1x8x8xbf16, #tpu.memory_space<vmem>>, vector<1x8x8xbf16>
    %6 = vector.shape_cast %5 : vector<1x8x8xbf16> to vector<8x8xbf16>
    %7 = arith.extf %6 : vector<8x8xbf16> to vector<8x8xf32>
    %8 = arith.truncf %4 : vector<8x32xf32> to vector<8x32xbf16>
    %c0_6 = arith.constant 0 : index
    %c0_7 = arith.constant 0 : index
    %9 = vector.load %arg5[%c0_6, %c0_7] : memref<32x32xbf16, #tpu.memory_space<vmem>>, vector<32x32xbf16>
    %cst = arith.constant dense<0.000000e+00> : vector<8x32xf32>
    %10 = tpu.matmul %8, %9, %cst {dimension_numbers = #tpu.dot_dimension_numbers<[1], [0], [0], [1], [0, 0, 1, 1], [], []>} : vector<8x32xbf16>, vector<32x32xbf16>, vector<8x32xf32> -> vector<8x32xf32>
    %c0_8 = arith.constant 0 : index
    %c0_9 = arith.constant 0 : index
    %11 = vector.load %arg6[%c0_8, %c0_9] : memref<1x32xf32, #tpu.memory_space<vmem>>, vector<1x32xf32>
    %12 = vector.broadcast %11 : vector<1x32xf32> to vector<8x32xf32>
    %13 = arith.addf %10, %12 : vector<8x32xf32>
    %14 = arith.truncf %13 : vector<8x32xf32> to vector<8x32xbf16>
    %c0_10 = arith.constant 0 : index
    %c0_11 = arith.constant 0 : index
    %15 = vector.load %arg22[%c0_10, %c0_11] : memref<8x32xbf16, #tpu.memory_space<vmem>>, vector<8x32xbf16>
    %c0_12 = arith.constant 0 : index
    %c0_13 = arith.constant 0 : index
    %16 = vector.load %arg23[%c0_12, %c0_13] : memref<8x32xbf16, #tpu.memory_space<vmem>>, vector<8x32xbf16>
    %cst_14 = arith.constant 0.000000e+00 : f32
    %17 = vector.broadcast %cst_14 : f32 to vector<8x32xf32>
    %18 = vector.extract_strided_slice %14 {offsets = [0, 0], sizes = [8, 8], strides = [1, 1]} : vector<8x32xbf16> to vector<8x8xbf16>
    %19 = vector.extract_strided_slice %15 {offsets = [0, 0], sizes = [8, 8], strides = [1, 1]} : vector<8x32xbf16> to vector<8x8xbf16>
    %20 = vector.extract_strided_slice %16 {offsets = [0, 0], sizes = [8, 8], strides = [1, 1]} : vector<8x32xbf16> to vector<8x8xbf16>
    %cst_15 = arith.constant dense<0.000000e+00> : vector<8x8xf32>
    %21 = tpu.matmul %18, %19, %cst_15 {dimension_numbers = #tpu.dot_dimension_numbers<[1], [1], [0], [0], [0, 0, 1, 0], [], []>} : vector<8x8xbf16>, vector<8x8xbf16>, vector<8x8xf32> -> vector<8x8xf32>
    %cst_16 = arith.constant 0.353553385 : f32
    %22 = vector.broadcast %cst_16 : f32 to vector<8x8xf32>
    %23 = arith.mulf %21, %22 : vector<8x8xf32>
    %24 = arith.addf %23, %7 : vector<8x8xf32>
    %cst_17 = arith.constant dense<0xFF800000> : vector<8xf32>
    %25 = vector.multi_reduction <maximumf>, %24, %cst_17 [1] : vector<8x8xf32> to vector<8xf32>
    %26 = vector.shape_cast %25 : vector<8xf32> to vector<8x1xf32>
    %27 = vector.broadcast %26 : vector<8x1xf32> to vector<8x8xf32>
    %28 = arith.subf %24, %27 : vector<8x8xf32>
    %29 = math.exp %28 : vector<8x8xf32>
    %cst_18 = arith.constant dense<0.000000e+00> : vector<8xf32>
    %30 = vector.multi_reduction <add>, %29, %cst_18 [1] : vector<8x8xf32> to vector<8xf32>
    %31 = vector.shape_cast %30 : vector<8xf32> to vector<8x1xf32>
    %32 = tpu.reciprocal %31 {approx = true} : vector<8x1xf32> -> vector<8x1xf32>
    %33 = vector.broadcast %32 : vector<8x1xf32> to vector<8x8xf32>
    %34 = arith.mulf %29, %33 : vector<8x8xf32>
    %35 = arith.truncf %34 : vector<8x8xf32> to vector<8x8xbf16>
    %cst_19 = arith.constant dense<0.000000e+00> : vector<8x8xf32>
    %36 = tpu.matmul %35, %20, %cst_19 {dimension_numbers = #tpu.dot_dimension_numbers<[1], [0], [0], [1], [0, 0, 1, 1], [], []>} : vector<8x8xbf16>, vector<8x8xbf16>, vector<8x8xf32> -> vector<8x8xf32>
    %37 = arith.truncf %36 : vector<8x8xf32> to vector<8x8xbf16>
    %c0_20 = arith.constant 0 : index
    %c0_21 = arith.constant 0 : index
    %38 = vector.load %arg11[%c0_20, %c0_21] : memref<32x32xbf16, #tpu.memory_space<vmem>>, vector<8x32xbf16>
    %cst_22 = arith.constant dense<0.000000e+00> : vector<8x32xf32>
    %39 = tpu.matmul %37, %38, %cst_22 {dimension_numbers = #tpu.dot_dimension_numbers<[1], [0], [0], [1], [0, 0, 1, 1], [], []>} : vector<8x8xbf16>, vector<8x32xbf16>, vector<8x32xf32> -> vector<8x32xf32>
    %40 = arith.addf %17, %39 : vector<8x32xf32>
    %41 = vector.extract_strided_slice %14 {offsets = [0, 8], sizes = [8, 8], strides = [1, 1]} : vector<8x32xbf16> to vector<8x8xbf16>
    %42 = vector.extract_strided_slice %15 {offsets = [0, 8], sizes = [8, 8], strides = [1, 1]} : vector<8x32xbf16> to vector<8x8xbf16>
    %43 = vector.extract_strided_slice %16 {offsets = [0, 8], sizes = [8, 8], strides = [1, 1]} : vector<8x32xbf16> to vector<8x8xbf16>
    %cst_23 = arith.constant dense<0.000000e+00> : vector<8x8xf32>
    %44 = tpu.matmul %41, %42, %cst_23 {dimension_numbers = #tpu.dot_dimension_numbers<[1], [1], [0], [0], [0, 0, 1, 0], [], []>} : vector<8x8xbf16>, vector<8x8xbf16>, vector<8x8xf32> -> vector<8x8xf32>
    %cst_24 = arith.constant 0.353553385 : f32
    %45 = vector.broadcast %cst_24 : f32 to vector<8x8xf32>
    %46 = arith.mulf %44, %45 : vector<8x8xf32>
    %47 = arith.addf %46, %7 : vector<8x8xf32>
    %cst_25 = arith.constant dense<0xFF800000> : vector<8xf32>
    %48 = vector.multi_reduction <maximumf>, %47, %cst_25 [1] : vector<8x8xf32> to vector<8xf32>
    %49 = vector.shape_cast %48 : vector<8xf32> to vector<8x1xf32>
    %50 = vector.broadcast %49 : vector<8x1xf32> to vector<8x8xf32>
    %51 = arith.subf %47, %50 : vector<8x8xf32>
    %52 = math.exp %51 : vector<8x8xf32>
    %cst_26 = arith.constant dense<0.000000e+00> : vector<8xf32>
    %53 = vector.multi_reduction <add>, %52, %cst_26 [1] : vector<8x8xf32> to vector<8xf32>
    %54 = vector.shape_cast %53 : vector<8xf32> to vector<8x1xf32>
    %55 = tpu.reciprocal %54 {approx = true} : vector<8x1xf32> -> vector<8x1xf32>
    %56 = vector.broadcast %55 : vector<8x1xf32> to vector<8x8xf32>
    %57 = arith.mulf %52, %56 : vector<8x8xf32>
    %58 = arith.truncf %57 : vector<8x8xf32> to vector<8x8xbf16>
    %cst_27 = arith.constant dense<0.000000e+00> : vector<8x8xf32>
    %59 = tpu.matmul %58, %43, %cst_27 {dimension_numbers = #tpu.dot_dimension_numbers<[1], [0], [0], [1], [0, 0, 1, 1], [], []>} : vector<8x8xbf16>, vector<8x8xbf16>, vector<8x8xf32> -> vector<8x8xf32>
    %60 = arith.truncf %59 : vector<8x8xf32> to vector<8x8xbf16>
    %c8 = arith.constant 8 : index
    %c0_28 = arith.constant 0 : index
    %61 = vector.load %arg11[%c8, %c0_28] : memref<32x32xbf16, #tpu.memory_space<vmem>>, vector<8x32xbf16>
    %cst_29 = arith.constant dense<0.000000e+00> : vector<8x32xf32>
    %62 = tpu.matmul %60, %61, %cst_29 {dimension_numbers = #tpu.dot_dimension_numbers<[1], [0], [0], [1], [0, 0, 1, 1], [], []>} : vector<8x8xbf16>, vector<8x32xbf16>, vector<8x32xf32> -> vector<8x32xf32>
    %63 = arith.addf %40, %62 : vector<8x32xf32>
    %64 = vector.extract_strided_slice %14 {offsets = [0, 16], sizes = [8, 8], strides = [1, 1]} : vector<8x32xbf16> to vector<8x8xbf16>
    %65 = vector.extract_strided_slice %15 {offsets = [0, 16], sizes = [8, 8], strides = [1, 1]} : vector<8x32xbf16> to vector<8x8xbf16>
    %66 = vector.extract_strided_slice %16 {offsets = [0, 16], sizes = [8, 8], strides = [1, 1]} : vector<8x32xbf16> to vector<8x8xbf16>
    %cst_30 = arith.constant dense<0.000000e+00> : vector<8x8xf32>
    %67 = tpu.matmul %64, %65, %cst_30 {dimension_numbers = #tpu.dot_dimension_numbers<[1], [1], [0], [0], [0, 0, 1, 0], [], []>} : vector<8x8xbf16>, vector<8x8xbf16>, vector<8x8xf32> -> vector<8x8xf32>
    %cst_31 = arith.constant 0.353553385 : f32
    %68 = vector.broadcast %cst_31 : f32 to vector<8x8xf32>
    %69 = arith.mulf %67, %68 : vector<8x8xf32>
    %70 = arith.addf %69, %7 : vector<8x8xf32>
    %cst_32 = arith.constant dense<0xFF800000> : vector<8xf32>
    %71 = vector.multi_reduction <maximumf>, %70, %cst_32 [1] : vector<8x8xf32> to vector<8xf32>
    %72 = vector.shape_cast %71 : vector<8xf32> to vector<8x1xf32>
    %73 = vector.broadcast %72 : vector<8x1xf32> to vector<8x8xf32>
    %74 = arith.subf %70, %73 : vector<8x8xf32>
    %75 = math.exp %74 : vector<8x8xf32>
    %cst_33 = arith.constant dense<0.000000e+00> : vector<8xf32>
    %76 = vector.multi_reduction <add>, %75, %cst_33 [1] : vector<8x8xf32> to vector<8xf32>
    %77 = vector.shape_cast %76 : vector<8xf32> to vector<8x1xf32>
    %78 = tpu.reciprocal %77 {approx = true} : vector<8x1xf32> -> vector<8x1xf32>
    %79 = vector.broadcast %78 : vector<8x1xf32> to vector<8x8xf32>
    %80 = arith.mulf %75, %79 : vector<8x8xf32>
    %81 = arith.truncf %80 : vector<8x8xf32> to vector<8x8xbf16>
    %cst_34 = arith.constant dense<0.000000e+00> : vector<8x8xf32>
    %82 = tpu.matmul %81, %66, %cst_34 {dimension_numbers = #tpu.dot_dimension_numbers<[1], [0], [0], [1], [0, 0, 1, 1], [], []>} : vector<8x8xbf16>, vector<8x8xbf16>, vector<8x8xf32> -> vector<8x8xf32>
    %83 = arith.truncf %82 : vector<8x8xf32> to vector<8x8xbf16>
    %c16 = arith.constant 16 : index
    %c0_35 = arith.constant 0 : index
    %84 = vector.load %arg11[%c16, %c0_35] : memref<32x32xbf16, #tpu.memory_space<vmem>>, vector<8x32xbf16>
    %cst_36 = arith.constant dense<0.000000e+00> : vector<8x32xf32>
    %85 = tpu.matmul %83, %84, %cst_36 {dimension_numbers = #tpu.dot_dimension_numbers<[1], [0], [0], [1], [0, 0, 1, 1], [], []>} : vector<8x8xbf16>, vector<8x32xbf16>, vector<8x32xf32> -> vector<8x32xf32>
    %86 = arith.addf %63, %85 : vector<8x32xf32>
    %87 = vector.extract_strided_slice %14 {offsets = [0, 24], sizes = [8, 8], strides = [1, 1]} : vector<8x32xbf16> to vector<8x8xbf16>
    %88 = vector.extract_strided_slice %15 {offsets = [0, 24], sizes = [8, 8], strides = [1, 1]} : vector<8x32xbf16> to vector<8x8xbf16>
    %89 = vector.extract_strided_slice %16 {offsets = [0, 24], sizes = [8, 8], strides = [1, 1]} : vector<8x32xbf16> to vector<8x8xbf16>
    %cst_37 = arith.constant dense<0.000000e+00> : vector<8x8xf32>
    %90 = tpu.matmul %87, %88, %cst_37 {dimension_numbers = #tpu.dot_dimension_numbers<[1], [1], [0], [0], [0, 0, 1, 0], [], []>} : vector<8x8xbf16>, vector<8x8xbf16>, vector<8x8xf32> -> vector<8x8xf32>
    %cst_38 = arith.constant 0.353553385 : f32
    %91 = vector.broadcast %cst_38 : f32 to vector<8x8xf32>
    %92 = arith.mulf %90, %91 : vector<8x8xf32>
    %93 = arith.addf %92, %7 : vector<8x8xf32>
    %cst_39 = arith.constant dense<0xFF800000> : vector<8xf32>
    %94 = vector.multi_reduction <maximumf>, %93, %cst_39 [1] : vector<8x8xf32> to vector<8xf32>
    %95 = vector.shape_cast %94 : vector<8xf32> to vector<8x1xf32>
    %96 = vector.broadcast %95 : vector<8x1xf32> to vector<8x8xf32>
    %97 = arith.subf %93, %96 : vector<8x8xf32>
    %98 = math.exp %97 : vector<8x8xf32>
    %cst_40 = arith.constant dense<0.000000e+00> : vector<8xf32>
    %99 = vector.multi_reduction <add>, %98, %cst_40 [1] : vector<8x8xf32> to vector<8xf32>
    %100 = vector.shape_cast %99 : vector<8xf32> to vector<8x1xf32>
    %101 = tpu.reciprocal %100 {approx = true} : vector<8x1xf32> -> vector<8x1xf32>
    %102 = vector.broadcast %101 : vector<8x1xf32> to vector<8x8xf32>
    %103 = arith.mulf %98, %102 : vector<8x8xf32>
    %104 = arith.truncf %103 : vector<8x8xf32> to vector<8x8xbf16>
    %cst_41 = arith.constant dense<0.000000e+00> : vector<8x8xf32>
    %105 = tpu.matmul %104, %89, %cst_41 {dimension_numbers = #tpu.dot_dimension_numbers<[1], [0], [0], [1], [0, 0, 1, 1], [], []>} : vector<8x8xbf16>, vector<8x8xbf16>, vector<8x8xf32> -> vector<8x8xf32>
    %106 = arith.truncf %105 : vector<8x8xf32> to vector<8x8xbf16>
    %c24 = arith.constant 24 : index
    %c0_42 = arith.constant 0 : index
    %107 = vector.load %arg11[%c24, %c0_42] : memref<32x32xbf16, #tpu.memory_space<vmem>>, vector<8x32xbf16>
    %cst_43 = arith.constant dense<0.000000e+00> : vector<8x32xf32>
    %108 = tpu.matmul %106, %107, %cst_43 {dimension_numbers = #tpu.dot_dimension_numbers<[1], [0], [0], [1], [0, 0, 1, 1], [], []>} : vector<8x8xbf16>, vector<8x32xbf16>, vector<8x32xf32> -> vector<8x32xf32>
    %109 = arith.addf %86, %108 : vector<8x32xf32>
    %c0_44 = arith.constant 0 : index
    %c0_45 = arith.constant 0 : index
    %110 = vector.load %arg12[%c0_44, %c0_45] : memref<1x32xf32, #tpu.memory_space<vmem>>, vector<1x32xf32>
    %111 = vector.broadcast %110 : vector<1x32xf32> to vector<8x32xf32>
    %112 = arith.addf %109, %111 : vector<8x32xf32>
    %113 = arith.addf %112, %4 : vector<8x32xf32>
    %c0_46 = arith.constant 0 : index
    %c0_47 = arith.constant 0 : index
    %114 = vector.load %arg13[%c0_46, %c0_47] : memref<1x32xf32, #tpu.memory_space<vmem>>, vector<1x32xf32>
    %c0_48 = arith.constant 0 : index
    %c0_49 = arith.constant 0 : index
    %115 = vector.load %arg14[%c0_48, %c0_49] : memref<1x32xf32, #tpu.memory_space<vmem>>, vector<1x32xf32>
    %cst_50 = arith.constant dense<0.000000e+00> : vector<8xf32>
    %116 = vector.multi_reduction <add>, %113, %cst_50 [1] : vector<8x32xf32> to vector<8xf32>
    %117 = vector.shape_cast %116 : vector<8xf32> to vector<8x1xf32>
    %cst_51 = arith.constant 3.200000e+01 : f32
    %118 = vector.broadcast %cst_51 : f32 to vector<8x1xf32>
    %119 = arith.divf %117, %118 : vector<8x1xf32>
    %120 = vector.broadcast %119 : vector<8x1xf32> to vector<8x32xf32>
    %121 = arith.subf %113, %120 : vector<8x32xf32>
    %122 = arith.mulf %121, %121 : vector<8x32xf32>
    %cst_52 = arith.constant dense<0.000000e+00> : vector<8xf32>
    %123 = vector.multi_reduction <add>, %122, %cst_52 [1] : vector<8x32xf32> to vector<8xf32>
    %124 = vector.shape_cast %123 : vector<8xf32> to vector<8x1xf32>
    %cst_53 = arith.constant 3.200000e+01 : f32
    %125 = vector.broadcast %cst_53 : f32 to vector<8x1xf32>
    %126 = arith.divf %124, %125 : vector<8x1xf32>
    %127 = vector.broadcast %119 : vector<8x1xf32> to vector<8x32xf32>
    %128 = arith.subf %113, %127 : vector<8x32xf32>
    %cst_54 = arith.constant 9.99999997E-7 : f32
    %129 = vector.broadcast %cst_54 : f32 to vector<8x1xf32>
    %130 = arith.addf %126, %129 : vector<8x1xf32>
    %131 = math.rsqrt %130 : vector<8x1xf32>
    %132 = vector.broadcast %131 : vector<8x1xf32> to vector<8x32xf32>
    %133 = arith.mulf %128, %132 : vector<8x32xf32>
    %134 = vector.broadcast %114 : vector<1x32xf32> to vector<8x32xf32>
    %135 = arith.mulf %133, %134 : vector<8x32xf32>
    %136 = vector.broadcast %115 : vector<1x32xf32> to vector<8x32xf32>
    %137 = arith.addf %135, %136 : vector<8x32xf32>
    %138 = arith.truncf %137 : vector<8x32xf32> to vector<8x32xbf16>
    %c0_55 = arith.constant 0 : index
    %c0_56 = arith.constant 0 : index
    %139 = vector.load %arg15[%c0_55, %c0_56] : memref<32x64xbf16, #tpu.memory_space<vmem>>, vector<32x64xbf16>
    %cst_57 = arith.constant dense<0.000000e+00> : vector<8x64xf32>
    %140 = tpu.matmul %138, %139, %cst_57 {dimension_numbers = #tpu.dot_dimension_numbers<[1], [0], [0], [1], [0, 0, 1, 1], [], []>} : vector<8x32xbf16>, vector<32x64xbf16>, vector<8x64xf32> -> vector<8x64xf32>
    %c0_58 = arith.constant 0 : index
    %c0_59 = arith.constant 0 : index
    %141 = vector.load %arg16[%c0_58, %c0_59] : memref<1x64xf32, #tpu.memory_space<vmem>>, vector<1x64xf32>
    %142 = vector.broadcast %141 : vector<1x64xf32> to vector<8x64xf32>
    %143 = arith.addf %140, %142 : vector<8x64xf32>
    %cst_60 = arith.constant 0.000000e+00 : f32
    %144 = vector.broadcast %cst_60 : f32 to vector<8x64xf32>
    %145 = arith.maximumf %143, %144 : vector<8x64xf32>
    %146 = arith.truncf %145 : vector<8x64xf32> to vector<8x64xbf16>
    %c0_61 = arith.constant 0 : index
    %c0_62 = arith.constant 0 : index
    %147 = vector.load %arg17[%c0_61, %c0_62] : memref<64x32xbf16, #tpu.memory_space<vmem>>, vector<64x32xbf16>
    %cst_63 = arith.constant dense<0.000000e+00> : vector<8x32xf32>
    %148 = tpu.matmul %146, %147, %cst_63 {dimension_numbers = #tpu.dot_dimension_numbers<[1], [0], [0], [1], [0, 0, 1, 1], [], []>} : vector<8x64xbf16>, vector<64x32xbf16>, vector<8x32xf32> -> vector<8x32xf32>
    %c0_64 = arith.constant 0 : index
    %c0_65 = arith.constant 0 : index
    %149 = vector.load %arg18[%c0_64, %c0_65] : memref<1x32xf32, #tpu.memory_space<vmem>>, vector<1x32xf32>
    %150 = vector.broadcast %149 : vector<1x32xf32> to vector<8x32xf32>
    %151 = arith.addf %148, %150 : vector<8x32xf32>
    %152 = arith.addf %151, %137 : vector<8x32xf32>
    %c0_66 = arith.constant 0 : index
    %c0_67 = arith.constant 0 : index
    %153 = vector.load %arg19[%c0_66, %c0_67] : memref<1x32xf32, #tpu.memory_space<vmem>>, vector<1x32xf32>
    %c0_68 = arith.constant 0 : index
    %c0_69 = arith.constant 0 : index
    %154 = vector.load %arg20[%c0_68, %c0_69] : memref<1x32xf32, #tpu.memory_space<vmem>>, vector<1x32xf32>
    %cst_70 = arith.constant dense<0.000000e+00> : vector<8xf32>
    %155 = vector.multi_reduction <add>, %152, %cst_70 [1] : vector<8x32xf32> to vector<8xf32>
    %156 = vector.shape_cast %155 : vector<8xf32> to vector<8x1xf32>
    %cst_71 = arith.constant 3.200000e+01 : f32
    %157 = vector.broadcast %cst_71 : f32 to vector<8x1xf32>
    %158 = arith.divf %156, %157 : vector<8x1xf32>
    %159 = vector.broadcast %158 : vector<8x1xf32> to vector<8x32xf32>
    %160 = arith.subf %152, %159 : vector<8x32xf32>
    %161 = arith.mulf %160, %160 : vector<8x32xf32>
    %cst_72 = arith.constant dense<0.000000e+00> : vector<8xf32>
    %162 = vector.multi_reduction <add>, %161, %cst_72 [1] : vector<8x32xf32> to vector<8xf32>
    %163 = vector.shape_cast %162 : vector<8xf32> to vector<8x1xf32>
    %cst_73 = arith.constant 3.200000e+01 : f32
    %164 = vector.broadcast %cst_73 : f32 to vector<8x1xf32>
    %165 = arith.divf %163, %164 : vector<8x1xf32>
    %166 = vector.broadcast %158 : vector<8x1xf32> to vector<8x32xf32>
    %167 = arith.subf %152, %166 : vector<8x32xf32>
    %cst_74 = arith.constant 9.99999997E-7 : f32
    %168 = vector.broadcast %cst_74 : f32 to vector<8x1xf32>
    %169 = arith.addf %165, %168 : vector<8x1xf32>
    %170 = math.rsqrt %169 : vector<8x1xf32>
    %171 = vector.broadcast %170 : vector<8x1xf32> to vector<8x32xf32>
    %172 = arith.mulf %167, %171 : vector<8x32xf32>
    %173 = vector.broadcast %153 : vector<1x32xf32> to vector<8x32xf32>
    %174 = arith.mulf %172, %173 : vector<8x32xf32>
    %175 = vector.broadcast %154 : vector<1x32xf32> to vector<8x32xf32>
    %176 = arith.addf %174, %175 : vector<8x32xf32>
    %c0_75 = arith.constant 0 : index
    %c0_76 = arith.constant 0 : index
    %c0_77 = arith.constant 0 : index
    %177 = vector.load %arg21[%c0_75, %c0_76, %c0_77] : memref<1x8x32xf32, #tpu.memory_space<vmem>>, vector<1x8x32xf32>
    %178 = vector.shape_cast %177 : vector<1x8x32xf32> to vector<8x32xf32>
    %179 = vector.shape_cast %176 : vector<8x32xf32> to vector<1x8x32xf32>
    tpu.vector_store %arg21[%c0_75, %c0_76, %c0_77], %179 {strides = array<i32>} : memref<1x8x32xf32, #tpu.memory_space<vmem>>, vector<1x8x32xf32>,
    return
  }
  func.func @transform_0(%arg0: i32, %arg1: i32) -> (i32, i32, i32) {
    %c0_i32 = arith.constant 0 : i32
    %c0_i32_0 = arith.constant 0 : i32
    return %arg0, %arg1, %c0_i32 : i32, i32, i32
  }
  func.func @transform_1(%arg0: i32, %arg1: i32) -> (i32, i32, i32) {
    %c0_i32 = arith.constant 0 : i32
    %c0_i32_0 = arith.constant 0 : i32
    %c0_i32_1 = arith.constant 0 : i32
    return %arg0, %c0_i32, %c0_i32_0 : i32, i32, i32
  }
  func.func @transform_2(%arg0: i32, %arg1: i32) -> (i32, i32, i32) {
    %c0_i32 = arith.constant 0 : i32
    %c0_i32_0 = arith.constant 0 : i32
    return %arg0, %arg1, %c0_i32 : i32, i32, i32
  }
  func.func @transform_3(%arg0: i32, %arg1: i32) -> (i32, i32) {
    %c0_i32 = arith.constant 0 : i32
    %c0_i32_0 = arith.constant 0 : i32
    %c0_i32_1 = arith.constant 0 : i32
    return %c0_i32, %c0_i32_0 : i32, i32
  }
  func.func @transform_4(%arg0: i32, %arg1: i32) -> (i32, i32) {
    %c0_i32 = arith.constant 0 : i32
    %c0_i32_0 = arith.constant 0 : i32
    %c0_i32_1 = arith.constant 0 : i32
    return %c0_i32, %c0_i32_0 : i32, i32
  }
  func.func @transform_5(%arg0: i32, %arg1: i32) -> (i32, i32) {
    %c0_i32 = arith.constant 0 : i32
    %c0_i32_0 = arith.constant 0 : i32
    %c0_i32_1 = arith.constant 0 : i32
    return %c0_i32, %c0_i32_0 : i32, i32
  }
  func.func @transform_6(%arg0: i32, %arg1: i32) -> (i32, i32) {
    %c0_i32 = arith.constant 0 : i32
    %c0_i32_0 = arith.constant 0 : i32
    %c0_i32_1 = arith.constant 0 : i32
    return %c0_i32, %c0_i32_0 : i32, i32
  }
  func.func @transform_7(%arg0: i32, %arg1: i32) -> (i32, i32) {
    %c0_i32 = arith.constant 0 : i32
    %c0_i32_0 = arith.constant 0 : i32
    %c0_i32_1 = arith.constant 0 : i32
    return %c0_i32, %c0_i32_0 : i32, i32
  }
  func.func @transform_8(%arg0: i32, %arg1: i32) -> (i32, i32) {
    %c0_i32 = arith.constant 0 : i32
    %c0_i32_0 = arith.constant 0 : i32
    %c0_i32_1 = arith.constant 0 : i32
    return %c0_i32, %c0_i32_0 : i32, i32
  }
  func.func @transform_9(%arg0: i32, %arg1: i32) -> (i32, i32) {
    %c0_i32 = arith.constant 0 : i32
    %c0_i32_0 = arith.constant 0 : i32
    %c0_i32_1 = arith.constant 0 : i32
    return %c0_i32, %c0_i32_0 : i32, i32
  }
  func.func @transform_10(%arg0: i32, %arg1: i32) -> (i32, i32) {
    %c0_i32 = arith.constant 0 : i32
    %c0_i32_0 = arith.constant 0 : i32
    %c0_i32_1 = arith.constant 0 : i32
    return %c0_i32, %c0_i32_0 : i32, i32
  }
  func.func @transform_11(%arg0: i32, %arg1: i32) -> (i32, i32) {
    %c0_i32 = arith.constant 0 : i32
    %c0_i32_0 = arith.constant 0 : i32
    %c0_i32_1 = arith.constant 0 : i32
    return %c0_i32, %c0_i32_0 : i32, i32
  }
  func.func @transform_12(%arg0: i32, %arg1: i32) -> (i32, i32) {
    %c0_i32 = arith.constant 0 : i32
    %c0_i32_0 = arith.constant 0 : i32
    %c0_i32_1 = arith.constant 0 : i32
    return %c0_i32, %c0_i32_0 : i32, i32
  }
  func.func @transform_13(%arg0: i32, %arg1: i32) -> (i32, i32) {
    %c0_i32 = arith.constant 0 : i32
    %c0_i32_0 = arith.constant 0 : i32
    %c0_i32_1 = arith.constant 0 : i32
    return %c0_i32, %c0_i32_0 : i32, i32
  }
  func.func @transform_14(%arg0: i32, %arg1: i32) -> (i32, i32) {
    %c0_i32 = arith.constant 0 : i32
    %c0_i32_0 = arith.constant 0 : i32
    %c0_i32_1 = arith.constant 0 : i32
    return %c0_i32, %c0_i32_0 : i32, i32
  }
  func.func @transform_15(%arg0: i32, %arg1: i32) -> (i32, i32) {
    %c0_i32 = arith.constant 0 : i32
    %c0_i32_0 = arith.constant 0 : i32
    %c0_i32_1 = arith.constant 0 : i32
    return %c0_i32, %c0_i32_0 : i32, i32
  }
  func.func @transform_16(%arg0: i32, %arg1: i32) -> (i32, i32) {
    %c0_i32 = arith.constant 0 : i32
    %c0_i32_0 = arith.constant 0 : i32
    %c0_i32_1 = arith.constant 0 : i32
    return %c0_i32, %c0_i32_0 : i32, i32
  }
  func.func @transform_17(%arg0: i32, %arg1: i32) -> (i32, i32) {
    %c0_i32 = arith.constant 0 : i32
    %c0_i32_0 = arith.constant 0 : i32
    %c0_i32_1 = arith.constant 0 : i32
    return %c0_i32, %c0_i32_0 : i32, i32
  }
  func.func @transform_18(%arg0: i32, %arg1: i32) -> (i32, i32) {
    %c0_i32 = arith.constant 0 : i32
    %c0_i32_0 = arith.constant 0 : i32
    %c0_i32_1 = arith.constant 0 : i32
    return %c0_i32, %c0_i32_0 : i32, i32
  }
  func.func @transform_19(%arg0: i32, %arg1: i32) -> (i32, i32, i32) {
    %c0_i32 = arith.constant 0 : i32
    %c0_i32_0 = arith.constant 0 : i32
    return %arg0, %arg1, %c0_i32 : i32, i32, i32
  }
}

</mosaic_0001>

<bundles_post_ra>
// kernel: tpu_custom_call.1
= control target key start
LH: loop header
LB: loop body
LE: loop exit
PB: predicated region body
PF: predicated region fallthrough
CT: control target
= control target key end

     0   :  { %s2424_s0 = inlined_call_operand.vmem [shape: f32[2,8,32], index: 0, kind: input, shape index: {}]   ;;  %s2425_s1 = inlined_call_operand.hbm [shape: bf16[2,8,32], index: 1, kind: input, shape index: {}]   ;;  %s2426_s2 = inlined_call_operand.hbm [shape: bf16[2,8,8], index: 2, kind: input, shape index: {}]   ;;  %s2427_s3 = inlined_call_operand.vmem [shape: bf16[32,32], index: 3, kind: input, shape index: {}]   ;;  %s2428_s4 = inlined_call_operand.vmem [shape: f32[1,32], index: 4, kind: input, shape index: {}]   ;;  %s2429_s5 = inlined_call_operand.vmem [shape: bf16[32,32], index: 5, kind: input, shape index: {}]   ;;  %s2430_s6 = inlined_call_operand.vmem [shape: f32[1,32], index: 6, kind: input, shape index: {}]   ;;  %s2431_s7 = inlined_call_operand.hbm [shape: bf16[32,32], index: 7, kind: input, shape index: {}]   ;;  %s2432_s8 = inlined_call_operand.vmem [shape: f32[1,32], index: 8, kind: input, shape index: {}]   ;;  %s2433_s9 = inlined_call_operand.hbm [shape: bf16[32,32], index: 9, kind: input, shape index: {}]   ;;  %s2434_s10 = inlined_call_operand.vmem [shape: f32[1,32], index: 10, kind: input, shape index: {}]   ;;  %s2435_s11 = inlined_call_operand.vmem [shape: f32[1,32], index: 11, kind: input, shape index: {}]   ;;  %s2436_s12 = inlined_call_operand.vmem [shape: f32[1,32], index: 12, kind: input, shape index: {}]   ;;  %s2437_s13 = inlined_call_operand.hbm [shape: bf16[32,64], index: 13, kind: input, shape index: {}]   ;;  %s2438_s14 = inlined_call_operand.vmem [shape: f32[1,64], index: 14, kind: input, shape index: {}]   ;;  %s2439_s15 = inlined_call_operand.vmem [shape: bf16[64,32], index: 15, kind: input, shape index: {}]   ;;  %s2440_s16 = inlined_call_operand.vmem [shape: f32[1,32], index: 16, kind: input, shape index: {}]   ;;  %s2441_s17 = inlined_call_operand.vmem [shape: f32[1,32], index: 17, kind: input, shape index: {}]   ;;  %s2442_s18 = inlined_call_operand.vmem [shape: f32[1,32], index: 18, kind: input, shape index: {}]   ;;  %s2443_s19 = inlined_call_operand.hbm [shape: f32[2,8,32], index: 19, kind: output, shape index: {}]  }
   0x1   :  { %2454 = sst [smem:[#allocation26_spill]] %s2424_s0 }
   0x2   :  { %2455 = sst [smem:[#allocation27_spill]] %s2425_s1 }
   0x3   :  { %2456 = sst [smem:[#allocation28_spill]] %s2426_s2 }
   0x4   :  { %2457 = sst [smem:[#allocation29_spill]] %s2427_s3 }
   0x5   :  { %2458 = sst [smem:[#allocation30_spill]] %s2431_s7 }
   0x6   :  { %2459 = sst [smem:[#allocation31_spill]] %s2433_s9 }
   0x7   :  { %2460 = sst [smem:[#allocation32_spill]] %s2435_s11 }
   0x8   :  { %2461 = sst [smem:[#allocation33_spill]] %s2436_s12 }
   0x9   :  { %2462 = sst [smem:[#allocation34_spill]] %s2437_s13 }
   0xa   :  { %2463 = sst [smem:[#allocation35_spill]] %s2438_s14 }
   0xb   :  { %2464 = sst [smem:[#allocation36_spill]] %s2439_s15 }
   0xc   :  { %2465 = sst [smem:[#allocation37_spill]] %s2440_s16 }
   0xd   :  { %2466 = sst [smem:[#allocation38_spill]] %s2441_s17 }
   0xe   :  { %2467 = sst [smem:[#allocation39_spill]] %s2442_s18 }
   0xf   :  { %2468 = sst [smem:[#allocation40_spill]] %s2443_s19 }
  0x10   :  { %24 = vsyncpa [#allocation5], 0 }
  0x11   :  { %26 = vsyncpa [#allocation5 + $0x1], 0 }
  0x12   :  { %27 = vsyncpa [#allocation8], 0 }
  0x13   :  { %29 = vsyncpa [#allocation8 + $0x1], 0 }
  0x14   :  { %30 = vsyncpa [#allocation11], 0 }
  0x15   :  { %31 = vsyncpa [#allocation6], 0 }
  0x16   :  { %33 = vsyncpa [#allocation6 + $0x1], 0  ;;  %s2126_s0 = smov 0   ;;  %s2128_s30 = smov 0  }
  0x17   :  { %s2130_s20 = smov 0   ;;  %s2132_s21 = smov 0  }
  0x18   :  { %s2134_s1 = smov 0   ;;  %s2136_s22 = smov 0  }
  0x19 LB: > { %2469 = sst [smem:[#allocation19_spill]] %s1995_s0  ;;  %s2157_s2 = sadd.s32 4294967295, %s2015_s22   ;;  %s2015_s22 = sphi %s2136_s22, %s39_s22   ;;  %s2011_s1 = sphi %s2134_s1, %s2503_s1   ;;  %s2007_s21 = sphi %s2132_s21, %s2502_s21   ;;  %s2003_s20 = sphi %s2130_s20, %s2501_s20   ;;  %s1999_s30 = sphi %s2128_s30, %s2505_s30   ;;  %s1995_s0 = sphi %s2126_s0, %s2504_s0  }
  0x1a   : > { %2470 = sst [smem:[#allocation20_spill]] %s2003_s20  ;;  %p1537_p0 = scmp.ge.s32.totalorder %s2015_s22, 1 }
  0x1b   : > { %2471 = sst [smem:[#allocation21_spill]] %s2011_s1  ;;  %p100_p1 = scmp.eq.s32.totalorder %s2157_s2, 0 }
  0x1c   : > { %p502_p2 = scmp.lt.s32.totalorder %s2015_s22, 3  ;;  %s2472_s7 = sld [smem:[#allocation30_spill]] }
  0x1d   : > { %s2017_s26 = smov [#allocation9]   ;;  %p1541_p6 = scmp.ge.s32.totalorder %s2015_s22, 2 }
  0x1e   : > { %p2165_p3 = pnand %p1537_p0, %p502_p2  ;;  %s527_s27 = sshll.u32 %s2017_s26, 4  ;;  %s528_s27 = int_to_ptr.vmem [resolvable:$true] %s527_s27 }
  0x1f   : > { %s2475_s9 = sld [smem:[#allocation31_spill]]  ;;  %s2019_s26 = smov 4  }
  0x20   : > { %p1653_p4 = pneg %p2165_p3  ;;  %s2020_s18 = smov [#allocation10]  }
  0x21   : > { %s544_s19 = sshll.u32 %s2020_s18, 4  ;;  %s2476_s13 = sld [smem:[#allocation34_spill]]  ;;  %s545_s19 = int_to_ptr.vmem [resolvable:$true] %s544_s19 }
  0x22   : > { %s525_s25 = sshll.u32 %s2472_s7, 4  ;;  %p2173_p5 = pnand %p1653_p4, %p100_p1  ;;  %s526_s25 = int_to_ptr.hbm [resolvable:$true] %s525_s25 }
  0x23   : > { %s2018_s7 = smov 64   ;;  %s2021_s23 = smov [#allocation12]  }
  0x24   : > { %1656 = dma.hbm_to_vmem [thread:$0]  (!%p2173_p5), %s526_s25, 256, %s528_s27, [#allocation8], %s2018_s7, %s2018_s7, %s2019_s26  }
  0x25   : > { %s542_s24 = sshll.u32 %s2475_s9, 4  ;;  %s567_s9 = sshll.u32 %s2021_s23, 4  ;;  %s543_s24 = int_to_ptr.hbm [resolvable:$true] %s542_s24  ;;  %s568_s9 = int_to_ptr.vmem [resolvable:$true] %s567_s9 }
  0x26   : > { %1659 = dma.hbm_to_vmem [thread:$0]  (!%p2173_p5), %s543_s24, 256, %s545_s19, [#allocation11], %s2018_s7, %s2018_s7, %s2019_s26  }
  0x27   : > { %s565_s29 = sshll.u32 %s2476_s13, 4  ;;  %s1536_s25 = sadd.s32 4294967294, %s2015_s22   ;;  %s566_s29 = int_to_ptr.hbm [resolvable:$true] %s565_s29 }
  0x28   : > { %1662 = dma.hbm_to_vmem [thread:$0]  (!%p2173_p5), %s566_s29, 256, %s568_s9, [#allocation11], %s2018_s7, %s2018_s7, %s2019_s26  }
  0x29   : > { %s51_s18 = sadd.s32 1, %s2011_s1  ;;  %s86_s27 = sadd.s32 1, %s2003_s20 }
  0x2a   : > { %p53_p7 = scmp.ge.s32.totalorder %s51_s18, 2  ;;  %p93_p8 = scmp.ne.s32.totalorder %s2003_s20, %s1999_s30 }
  0x2b   : > { %p94_p9 = scmp.eq.s32.totalorder %s2015_s22, 0  ;;  %p99_p10 = scmp.ne.s32.totalorder %s1999_s30, %s1995_s0 }
  0x2c   : > { %s2507_s18 = smov (%p53_p7, %s51_s18), 0  ;;  %p489_p13 = scmp.eq.s32.totalorder %s2157_s2, 1 }
  0x2d   : > { %2477 = sst [smem:[#allocation22_spill]] %s2507_s18  ;;  %p2200_p11 = por %p94_p9, %p93_p8 }
  0x2e   : > { %p2206_p12 = por %p100_p1, %p99_p10  ;;  %s83_s9 = ssub.s32 %s2011_s1, %s2507_s18 }
  0x2f   : > { %p84_p0 = scmp.eq.s32.totalorder %s83_s9, 0  ;;  %p495_p2 = scmp.eq.s32.totalorder %s1536_s25, 1 }
  0x30   : > { %p2213_p4 = por %p489_p13, %p93_p8  ;;  %p1677_p5 = scmp.lt.s32.totalorder %s2015_s22, 2 }
  0x31   : > { %s2219_s19 = scalar_select %p84_p0, %s2003_s20, %s86_s27  }
  0x32   : > { %s2480_s17 = scalar_select %p2213_p4, 1, 0 }
  0x33   : > { %2482 = sst [smem:[#allocation24_spill]] %s2219_s19  ;;  %p2221_p7 = por %p495_p2, %p99_p10 }
  0x34   : > { %2481 = sst [smem:[#allocation23_spill]] %s2480_s17  ;;  %s606_s24 = sand.u32 1, %s2003_s20  }
  0x35   : > { %s2483_s28 = scalar_select %p2221_p7, 1, 0 }
  0x36   : > { %s1542_s26 = sshll.u32 %s606_s24, 2  ;;  %s1543_s29 = sshll.u32 %s2011_s1, 2 }
  0x37   : > { %2484 = sst [smem:[#allocation25_spill]] %s2483_s28  ;;  %s610_s25 = scalar_lea.vmem [#allocation4], %s1542_s26 }
  0x38   : > { %s2485_s18 = sld [smem:[#allocation27_spill]]  ;;  %s618_s0 = sshll.u32 %s610_s25, 4  ;;  %s619_s0 = int_to_ptr.vmem [resolvable:$true] %s618_s0 }
  0x39   : > { %p1664_p8 = pnand %p1677_p5, %p2200_p11  ;;  %s2486_s17 = sld [smem:[#allocation28_spill]] }
  0x3a   : > { %s625_s11 = sand.u32 1, %s2015_s22   ;;  %s607_s28 = scalar_lea.sflag [#allocation5], %s606_s24 }
  0x3b   : > { %s629_s1 = scalar_lea.vmem [#allocation7], %s1542_s26  ;;  %s626_s13 = scalar_lea.sflag [#allocation8], %s625_s11 }
  0x3c   : > { %s638_s15 = sshll.u32 %s629_s1, 4  ;;  %s639_s15 = int_to_ptr.vmem [resolvable:$true] %s638_s15 }
  0x3e   : > { %s614_s9 = scalar_lea.hbm %s2485_s18, %s1543_s29  ;;  %647 = sbr.rel (%p2165_p3) target bundleno = 2240 (0x8c0), region = 96 }
  0x3f   : > { %s616_s14 = sshll.u32 %s614_s9, 4  ;;  %s634_s12 = scalar_lea.hbm %s2486_s17, %s1543_s29  ;;  %s617_s14 = int_to_ptr.hbm [resolvable:$true] %s616_s14 }
  0x40   : > { %1666 = dma.hbm_to_vmem [thread:$0]  (!%p1664_p8), %s617_s14, 64, %s619_s0, %s607_s28  }
  0x41   : > { %s636_s20 = sshll.u32 %s634_s12, 4  ;;  %s2239_s18 = sand.u32 (!%p2165_p3), 1, %s1999_s30   ;;  %s637_s20 = int_to_ptr.hbm [resolvable:$true] %s636_s20 }
  0x42   : > { %1669 = dma.hbm_to_vmem [thread:$0]  (!%p1664_p8), %s637_s20, 64, %s639_s15, %s626_s13  }
  0x43   : > { %s1547_s16 = sshll.u32 %s2239_s18, 2  ;;  %s650_s17 = scalar_lea.sflag [#allocation5], %s2239_s18 }
  0x44   : > { %s653_s19 = scalar_lea.vmem [#allocation4], %s1547_s16 }
  0x45   : > { %1974 = dma.done.wait (%p2206_p12), %s650_s17, 64  }
  0x46   : > { %1976 = vsyncadd (%p2206_p12), %s650_s17, 4294967232  ;;  %s659_s11 = sand.u32 1, %s2157_s2   ;;  %s2248_s14 = scalar_lea.vmem [#allocation7], %s1547_s16 }
  0x47   : > { %s660_s12 = scalar_lea.sflag [#allocation8], %s659_s11 }
  0x48   : > { %1978 = dma.done.wait (%p2206_p12), %s660_s12, 64  }
  0x49   : > { %1980 = vsyncadd (%p2206_p12), %s660_s12, 4294967232 }
  0x4a   : > { %1982 = dma.done.wait (%p100_p1), [#allocation8], 256  }
  0x4b   : > { %1984 = vsyncadd (%p100_p1), [#allocation8], 4294967040 }
  0x4c   : > { %1986 = dma.done.wait (%p100_p1), [#allocation11], 512  }
  0x4d   : > { %1988 = vsyncadd (%p100_p1), [#allocation11], 4294966784  ;;  %p746_p3 = scmp.lt.s32.totalorder %s2007_s21, 1  ;;  %s2487_s3 = sld [smem:[#allocation26_spill]]  ;;  %v1624_v0 = vld [vmem:[%s2429_s5 + $0x8] sm:$0xff]  ;;  %v1623_v2 = vld [vmem:[%s2429_s5] sm:$0xff] }
  0x4e   : > { %s2488_s23 = sld [smem:[#allocation29_spill]]  ;;  %789 = vmatpush.bf16.msra.mxu0 %v1624_v0  ;;  %v758_v6 = vld [vmem:[%s653_s19] sm:$0xf]  ;;  %vm779_vm0 = vcmask 261120   ;;  %v1739_v7 = vld [vmem:[%s2430_s6] ss:$0 sm:$0xff] }
  0x4f   : > { %s747_s15 = scalar_select %p746_p3, %s2007_s21, 1  ;;  %vm797_vm1 = vcmask 257024   ;;  %v1740_v11 = vld [vmem:[%s2428_s4] ss:$0 sm:$0xff]  ;;  %vm878_vm2 = vcmask 64512   ;;  %v1625_v24 = vld [vmem:[#allocation9] sm:$0xff] }
  0x50   : > { %s2022_s19 = smov 112   ;;  %s2023_s12 = smov 120   ;;  %v1626_v23 = vld [vmem:[#allocation9 + $0x8] sm:$0xff]  ;;  %v835_v30 = vld [vmem:[%s2248_s14] sm:$0xf]  ;;  %vm915_vm3 = vcmask 1043456  }
  0x51   : > { %s1553_s0 = sshll.u32 %s747_s15, 3  ;;  %s2024_s15 = smov 104   ;;  %825 = vmatpush.bf16.msra.mxu1 %v1626_v23  ;;  %v2304_v31 = vunpack.c.l.bf16 %v835_v30  ;;  %v1741_v38 = vld [vmem:[%s2432_s8] ss:$0 sm:$0xff]  ;;  %v933_v62 = vld [vmem:[#allocation10] sm:$0xf] }
  0x52   : > { %790 = vmatpush.bf16.msra.mxu0 %v1623_v2  ;;  %v1026_v63 = vsel %vm915_vm3, %v933_v62, 0  ;;  %s2489_s28 = sld [smem:[#allocation36_spill]]  ;;  %vm1321_vm8 = vcmask 523264  }
  0x53   : > { %s752_s7 = scalar_lea.vmem %s2487_s3, %s1553_s0  ;;  %s2490_s2 = sld [smem:[#allocation32_spill]] }
  0x54   : > { %v1628_v1 = vld [vmem:[%s2488_s23 + $0x8] sm:$0xff]  ;;  %v1627_v3 = vld [vmem:[%s2488_s23] sm:$0xff]  ;;  %s2491_s13 = sld [smem:[#allocation33_spill]]  ;;  %s1552_s3 = sshll.u32 %s2239_s18, 3 }
  0x55   : > { %868 = vmatpush.bf16.msra.mxu2 %v1628_v1  ;;  %v2279_v4 = vld [vmem:[%s752_s7] sm:$0xff]  ;;  %1562 = vmatmul.msk.bf16.vlgmr.msra.gmra.mxu0 %vm779_vm0, %v758_v6  ;;  %s2492_s0 = sld [smem:[#allocation35_spill]]  ;;  %s1620_s7 = sshll.u32 %s2007_s21, 3 }
  0x56   : > { %v837_v5 = vpack.c.bf16 %v2279_v4, %v2279_v4  ;;  %826 = vmatpush.bf16.msra.mxu1 %v1625_v24  ;;  %s2493_s1 = sld [smem:[#allocation37_spill]]  ;;  %s745_s21 = scalar_lea.vmem [#allocation13], %s1552_s3 }
  0x57   : > { %s2494_s29 = sld [smem:[#allocation38_spill]] }
  0x58   : > { %s2495_s25 = sld [smem:[#allocation40_spill]] }
  0x59   : > { %869 = vmatpush.bf16.msra.mxu2 %v1627_v3  ;;  %1571 = vmatmul.msk.bf16.vlgmr.msra.gmra.mxu1 %vm779_vm0, %v758_v6  ;;  %s2497_s11 = sld [smem:[#allocation39_spill]] }
  0x5c   : > { %1580 = vmatmul.msk.bf16.vlgmr.msra.gmra.mxu2 %vm779_vm0, %v837_v5 }
  0x5e   : > { %s1384_s27 = scalar_lea.hbm %s2495_s25, %s1620_s7  ;;  %s1941_s3 = scalar_lea.hbm %s2495_s25, 16 }
  0xd2   : > { %v792_v8 = vpop.f32.mrf.mxu0 }
  0xd3   : > { %v793_v9 = vadd.f32 %v1739_v7, %v792_v8 }
  0xd5   : > { %v796_v10 = vpack.c.bf16 %v793_v9, %v793_v9 }
  0xd6   : > { %v828_v39 = vpop.f32.mrf.mxu1 }
  0xd7   : > { %798 = vst.msk [vmem:[#allocation2] sm:$0xf] %vm797_vm1, %v796_v10  ;;  %v829_v40 = vadd.f32 %v1741_v38, %v828_v39 }
  0xd9   : > { %v832_v41 = vpack.c.bf16 %v829_v40, %v829_v40 }
  0xda   : > { %v794_v13 = vpop.f32.mrf.mxu0 }
  0xdb   : > { %833 = vst.msk [vmem:[#allocation3] sm:$0xf] %vm797_vm1, %v832_v41 }
  0xde   : > { %v876_v15 = vld [vmem:[#allocation2] sm:$0xf]  ;;  %v830_v42 = vpop.f32.mrf.mxu1 }
  0xdf   : > { %v871_v12 = vpop.f32.mrf.mxu2  ;;  %v883_v17 = vsel %vm878_vm2, %v876_v15, 0  ;;  %v940_v18 = vunpack.c.l.b16 %v876_v15 }
  0xe0   : > { %v872_v14 = vadd.f32 %v1740_v11, %v871_v12  ;;  %892 = vmatpush.bf16.xpose.msra.mxu3 %v883_v17 }
  0xe1   : > { %v941_v20 = vpack.c.b16 %v940_v18, %v940_v18 }
  0xe2   : > { %v875_v16 = vpack.c.bf16 %v872_v14, %v872_v14  ;;  %v877_v58 = vld [vmem:[#allocation3] sm:$0xf] }
  0xe3   : > { %1043 = vrot.lane.b32.xlu2 %v941_v20, %s2022_s19  ;;  %942 = vrot.lane.b32.xlu1 %v941_v20, %s2023_s12  ;;  %v917_v59 = vsel %vm915_vm3, %v877_v58, 0  ;;  %v978_v14 = vunpack.c.l.b16 %v877_v58 }
  0xe4   : > { %v935_v21 = vunpack.c.l.b16 %v875_v16  ;;  %926 = vmatpush.bf16.msrb.mxu0 %v917_v59 }
  0xe6   : > { %v936_v22 = vpack.c.b16 %v935_v21, %v935_v21 }
  0xe7   : > { %v873_v19 = vpop.f32.mrf.mxu2  ;;  %1581 = vmatmul.msk.bf16.vlgmr.msra.gmra.mxu3 %vm878_vm2, %v875_v16  ;;  %v979_v16 = vpack.c.b16 %v978_v14, %v978_v14 }
  0xe8   : > { %1035 = vmatpush.bf16.msra.mxu0 %v1026_v63 }
  0xeb   : > { %1041 = vrot.lane.b32.xlu2 %v936_v22, %s2022_s19  ;;  %937 = vrot.lane.b32.xlu1 %v936_v22, %s2023_s12 }
  0xf3   : > { %1121 = vrot.lane.b32.xlu1 %v936_v22, %s2024_s15 }
 0x13d   : > { %v1044_v25 = vpop.permute.xlu2 %1043 }
 0x13e   : > { %v1049_v28 = vsel %vm878_vm2, %v1044_v25, 0 }
 0x145   : > { %v1042_v34 = vpop.permute.xlu2 %1041 }
 0x155   : > { %v943_v26 = vpop.permute.xlu1 %942 }
 0x156   : > { %v948_v27 = vsel %vm878_vm2, %v943_v26, 0 }
 0x157   : > { %957 = vmatpush.bf16.xpose.msrb.mxu1 %v948_v27 }
 0x15d   : > { %v938_v29 = vpop.permute.xlu1 %937 }
 0x15e   : > { %1583 = vmatmul.msk.bf16.vlgmr.msrb.gmra.mxu1 %vm878_vm2, %v938_v29 }
 0x15f   : > { %1058 = vmatpush.bf16.xpose.msra.mxu1 %v1049_v28 }
 0x165   : > { %v1122_v1 = vpop.permute.xlu1 %1121 }
 0x16a   : > { %v894_v32 = vpop.f32.mrf.mxu3 }
 0x16b   : > { %v898_v33 = vmul.f32 0.35355338, %v894_v32 }
 0x16d   : > { %v899_v35 = vadd.f32 %v898_v33, %v2304_v31 }
 0x16e   : > { %1587 = vmatmul.msk.bf16.vlgmr.msra.gmra.mxu1 %vm878_vm2, %v1042_v34  ;;  %v1002_v34 = vld [vmem:[#allocation10 + $0x4] sm:$0xf] }
 0x16f   : > { %v900_v36 = vsel %vm878_vm2, %v899_v35, -inf }
 0x170   : > { %901 = vmax.xlane.f32.xlu0 %v900_v36  ;;  %v1100_v36 = vld [vmem:[#allocation10 + $0x8] sm:$0xf] }
 0x172   : > { %v896_v37 = vpop.f32.mrf.mxu3 }
 0x173   : > { %v1105_v37 = vsel %vm915_vm3, %v1100_v36, 0 }
 0x1db   : > { %v959_v43 = vpop.f32.mrf.mxu1 }
 0x1dc   : > { %v963_v44 = vmul.f32 0.35355338, %v959_v43 }
 0x1de   : > { %v964_v45 = vadd.f32 %v963_v44, %v2304_v31 }
 0x1e0   : > { %v965_v46 = vsel %vm878_vm2, %v964_v45, -inf }
 0x1e1   : > { %966 = vmax.xlane.f32.xlu2 %v965_v46 }
 0x1e3   : > { %v961_v47 = vpop.f32.mrf.mxu1  ;;  %v902_v48 = vpop.xlane.xlu0 %901 }
 0x1e4   : > { %v903_v49 = vsub.f32 %v899_v35, %v902_v48  ;;  %v1007_v35 = vsel %vm915_vm3, %v1002_v34, 0 }
 0x1e5   : > { %1016 = vmatpush.bf16.msrb.mxu3 %v1007_v35 }
 0x1e6   : > { %v904_v50 = vmul.f32 1.442695, %v903_v49 }
 0x1e8   : > { %1749 = vpow2.f32 %v904_v50 }
 0x1e9   : > { %1114 = vmatpush.bf16.msra.mxu3 %v1105_v37 }
 0x1eb   : > { %v1060_v51 = vpop.f32.mrf.mxu1 }
 0x1ec   : > { %v1064_v52 = vmul.f32 0.35355338, %v1060_v51 }
 0x1ee   : > { %v1750_v53 = vpop.eup %1749  ;;  %v1065_v54 = vadd.f32 %v1064_v52, %v2304_v31 }
 0x1ef   : > { %v906_v55 = vsel %vm878_vm2, %v1750_v53, 0.0 }
 0x1f0   : > { %907 = vadd.xlane.f32.xlu0 %v906_v55  ;;  %v1066_v56 = vsel %vm878_vm2, %v1065_v54, -inf }
 0x1f1   : > { %1067 = vmax.xlane.f32.xlu1 %v1066_v56 }
 0x1f3   : > { %v1062_v57 = vpop.f32.mrf.mxu1 }
 0x204   : > { %1123 = vrot.lane.b32.xlu0 %v941_v20, %s2024_s15 }
 0x254   : > { %v967_v60 = vpop.xlane.xlu2 %966 }
 0x255   : > { %v968_v61 = vsub.f32 %v964_v45, %v967_v60 }
 0x257   : > { %v969_v0 = vmul.f32 1.442695, %v968_v61 }
 0x259   : > { %1751 = vpow2.f32 %v969_v0 }
 0x25f   : > { %v1752_v2 = vpop.eup %1751 }
 0x260   : > { %v971_v3 = vsel %vm878_vm2, %v1752_v2, 0.0 }
 0x261   : > { %972 = vadd.xlane.f32.xlu2 %v971_v3  ;;  %v1180_v3 = vld [vmem:[#allocation10 + $0xc] sm:$0xf] }
 0x263   : > { %v908_v5 = vpop.xlane.xlu0 %907 }
 0x264   : > { %1753 = vrcp.f32 %v908_v5  ;;  %v1068_v6 = vpop.xlane.xlu1 %1067  ;;  %v1185_v5 = vsel %vm915_vm3, %v1180_v3, 0 }
 0x265   : > { %v1069_v7 = vsub.f32 %v1065_v54, %v1068_v6 }
 0x267   : > { %v1070_v8 = vmul.f32 1.442695, %v1069_v7 }
 0x269   : > { %1755 = vpow2.f32 %v1070_v8 }
 0x26a   : > { %v1754_v9 = vpop.eup %1753 }
 0x26b   : > { %v910_v10 = vmul.f32 %v1754_v9, %v1750_v53  ;;  %v1742_v9 = vld [vmem:[%s2434_s10] ss:$0 sm:$0xff] }
 0x26d   : > { %v911_v11 = vpack.c.bf16 %v910_v10, %v910_v10 }
 0x26f   : > { %v1756_v12 = vpop.eup %1755  ;;  %1582 = vmatmul.msk.bf16.vlgmr.msrb.gmra.mxu0 %vm878_vm2, %v911_v11 }
 0x270   : > { %v1072_v13 = vsel %vm878_vm2, %v1756_v12, 0.0 }
 0x271   : > { %1073 = vadd.xlane.f32.xlu1 %v1072_v13 }
 0x276   : > { %v1124_v15 = vpop.permute.xlu0 %1123 }
 0x277   : > { %v1129_v17 = vsel %vm878_vm2, %v1124_v15, 0 }
 0x278   : > { %1138 = vmatpush.bf16.xpose.msrb.mxu0 %v1129_v17 }
 0x279   : > { %980 = vrot.lane.b32.xlu2 %v979_v16, %s2023_s12  ;;  %s1388_s12 = sshll.u32 %s1384_s27, 4  ;;  %s1389_s12 = int_to_ptr.hbm [resolvable:$true] %s1388_s12 }
 0x28a   : > { %1078 = vrot.lane.b32.xlu1 %v979_v16, %s2022_s19  ;;  %s1386_s19 = sshll.u32 %s745_s21, 4  ;;  %s1387_s19 = int_to_ptr.vmem [resolvable:$true] %s1386_s19 }
 0x2d4   : > { %v973_v18 = vpop.xlane.xlu2 %972 }
 0x2d5   : > { %1757 = vrcp.f32 %v973_v18 }
 0x2db   : > { %v1758_v19 = vpop.eup %1757 }
 0x2dc   : > { %v975_v20 = vmul.f32 %v1758_v19, %v1752_v2  ;;  %v981_v21 = vpop.permute.xlu2 %980 }
 0x2dd   : > { %v986_v22 = vsel %vm915_vm3, %v981_v21, 0 }
 0x2de   : > { %995 = vmatpush.bf16.msrb.mxu2 %v986_v22  ;;  %v976_v23 = vpack.c.bf16 %v975_v20, %v975_v20 }
 0x2e1   : > { %1584 = vmatmul.msk.bf16.vlgmr.msrb.gmra.mxu2 %vm878_vm2, %v976_v23 }
 0x2e4   : > { %v1074_v26 = vpop.xlane.xlu1 %1073 }
 0x2e5   : > { %1759 = vrcp.f32 %v1074_v26 }
 0x2eb   : > { %v1760_v28 = vpop.eup %1759 }
 0x2ec   : > { %v928_v24 = vpop.f32.mrf.mxu0  ;;  %v1076_v29 = vmul.f32 %v1760_v28, %v1756_v12  ;;  %v1629_v28 = vld [vmem:[#allocation12] sm:$0xff] }
 0x2ed   : > { %v932_v25 = vpack.c.bf16 %v928_v24, %v928_v24 }
 0x2ee   : > { %v1077_v33 = vpack.c.bf16 %v1076_v29, %v1076_v29  ;;  %v1634_v29 = vld [vmem:[%s2489_s28 + $0x18] sm:$0xff] }
 0x2ef   : > { %1586 = vmatmul.msk.bf16.vlgmr.msra.gmra.mxu0 %vm878_vm2, %v932_v25 }
 0x2f0   : > { %1329 = vmatpush.bf16.msra.mxu0 %v1634_v29 }
 0x2f4   : > { %v930_v27 = vpop.f32.mrf.mxu0 }
 0x2fc   : > { %v1079_v30 = vpop.permute.xlu1 %1078 }
 0x2fd   : > { %v1084_v32 = vsel %vm915_vm3, %v1079_v30, 0 }
 0x2fe   : > { %1093 = vmatpush.bf16.msra.mxu2 %v1084_v32 }
 0x2ff   : > { %1590 = vmatmul.msk.bf16.vlgmr.msrb.gmra.mxu0 %vm878_vm2, %v1122_v1 }
 0x301   : > { %1588 = vmatmul.msk.bf16.vlgmr.msra.gmra.mxu2 %vm878_vm2, %v1077_v33  ;;  %v1633_v33 = vld [vmem:[%s2489_s28 + $0x10] sm:$0xff] }
 0x302   : > { %1194 = vmatpush.bf16.msrb.mxu2 %v1185_v5  ;;  %1330 = vmatpush.bf16.msra.mxu0 %v1633_v33 }
 0x364   : > { %v997_v38 = vpop.f32.mrf.mxu2 }
 0x365   : > { %v1001_v39 = vpack.c.bf16 %v997_v38, %v997_v38 }
 0x367   : > { %1585 = vmatmul.msk.bf16.vlgmr.msrb.gmra.mxu3 %vm878_vm2, %v1001_v39 }
 0x36c   : > { %v999_v40 = vpop.f32.mrf.mxu2  ;;  %v1037_v41 = vpop.f32.mrf.mxu0 }
 0x374   : > { %v1039_v42 = vpop.f32.mrf.mxu0 }
 0x37c   : > { %v1140_v43 = vpop.f32.mrf.mxu0 }
 0x37d   : > { %v1144_v44 = vmul.f32 0.35355338, %v1140_v43  ;;  %v1744_v43 = vld [vmem:[%s2491_s13] ss:$0 sm:$0xff] }
 0x37f   : > { %v1145_v45 = vadd.f32 %v1144_v44, %v2304_v31 }
 0x381   : > { %v1146_v46 = vsel %vm878_vm2, %v1145_v45, -inf }
 0x382   : > { %1147 = vmax.xlane.f32.xlu0 %v1146_v46 }
 0x384   : > { %v1095_v47 = vpop.f32.mrf.mxu2  ;;  %v1142_v48 = vpop.f32.mrf.mxu0 }
 0x385   : > { %v1099_v49 = vpack.c.bf16 %v1095_v47, %v1095_v47  ;;  %v1632_v48 = vld [vmem:[%s2489_s28 + $0x8] sm:$0xff] }
 0x386   : > { %1331 = vmatpush.bf16.msra.mxu0 %v1632_v48 }
 0x387   : > { %1589 = vmatmul.msk.bf16.vlgmr.msra.gmra.mxu3 %vm878_vm2, %v1099_v49  ;;  %v1631_v49 = vld [vmem:[%s2489_s28] sm:$0xff] }
 0x38a   : > { %1332 = vmatpush.bf16.msra.mxu0 %v1631_v49 }
 0x38c   : > { %v1097_v50 = vpop.f32.mrf.mxu2 }
 0x38d   : > { %v1745_v50 = vld [vmem:[%s2492_s0] ss:$0 sm:$0xff]  ;;  %s1935_s0 = sshra.s32 %s1389_s12, 4  ;;  %s1936_s0 = int_to_ptr.hbm [resolvable:$true] %s1935_s0 }
 0x38e   : > { %s1937_s20 = scalar_lea.hbm %s1936_s0, 8  ;;  %p1942_p11 = scmp.lt.s32.totalorder %s1936_s0, %s2495_s25 }
 0x38f   : > { %p1938_p1 = scmp.ne.s32.totalorder %s1936_s0, %s1937_s20  ;;  %p1943_p12 = scmp.lt.s32.totalorder %s1941_s3, %s1937_s20 }
 0x391   : > { %p1939_p9 = pnand %p1938_p1, %p2213_p4  ;;  %p1944_p13 = por %p1943_p12, %p1942_p11 }
 0x393   : > { %p1940_p10 = pneg %p1939_p9 }
 0x395   : > { %p1945_p0 = pnand %p1944_p13, %p1940_p10 }
 0x3ea   : > { %v1018_v51 = vpop.f32.mrf.mxu3 }
 0x3eb   : > { %v1038_v31 = vadd.f32 %v1037_v41, %v1018_v51  ;;  %v1743_v41 = vld [vmem:[%s2490_s2] ss:$0 sm:$0xff] }
 0x3f2   : > { %v1020_v52 = vpop.f32.mrf.mxu3 }
 0x3f5   : > { %v1148_v53 = vpop.xlane.xlu0 %1147 }
 0x3f6   : > { %v1149_v54 = vsub.f32 %v1145_v45, %v1148_v53 }
 0x3f8   : > { %v1150_v55 = vmul.f32 1.442695, %v1149_v54 }
 0x3fa   : > { %1761 = vpow2.f32 %v1150_v55 }
 0x400   : > { %v1762_v56 = vpop.eup %1761 }
 0x401   : > { %v1152_v57 = vsel %vm878_vm2, %v1762_v56, 0.0 }
 0x402   : > { %1153 = vadd.xlane.f32.xlu0 %v1152_v57 }
 0x40a   : > { %v1116_v58 = vpop.f32.mrf.mxu3 }
 0x40b   : > { %v1120_v59 = vadd.f32 %v1116_v58, %v1038_v31 }
 0x412   : > { %v1118_v60 = vpop.f32.mrf.mxu3 }
 0x416   : > { %1158 = vrot.lane.b32.xlu0 %v979_v16, %s2024_s15  ;;  %v2025_v16 = vmov 32.0   ;;  %s1373_s15 = scalar_lea.sflag [#allocation6], %s2239_s18 }
 0x475   : > { %v1154_v61 = vpop.xlane.xlu0 %1153 }
 0x476   : > { %1763 = vrcp.f32 %v1154_v61 }
 0x477   : > { %1765 = vrcp.f32 %v2025_v16 }
 0x47c   : > { %v1764_v62 = vpop.eup %1763 }
 0x47d   : > { %v1156_v63 = vmul.f32 %v1764_v62, %v1762_v56  ;;  %v1766_v17 = vpop.eup %1765  ;;  %v1746_v56 = vld [vmem:[%s2493_s1] ss:$0 sm:$0xff] }
 0x47e   : > { %v1213_v18 = vmul.f32 32.0, %v1766_v17  ;;  %vm1217_vm4 = vweird.f32 %v1766_v17 }
 0x47f   : > { %v1157_v2 = vpack.c.bf16 %v1156_v63, %v1156_v63 }
 0x480   : > { %v1214_v19 = vsub.f32 1.0, %v1213_v18 }
 0x482   : > { %v1215_v20 = vmul.f32 %v1766_v17, %v1214_v19 }
 0x484   : > { %v1216_v21 = vadd.f32 %v1766_v17, %v1215_v20 }
 0x486   : > { %v1218_v22 = vsel %vm1217_vm4, %v1766_v17, %v1216_v21 }
 0x488   : > { %v1159_v0 = vpop.permute.xlu0 %1158 }
 0x489   : > { %v1164_v1 = vsel %vm915_vm3, %v1159_v0, 0 }
 0x48a   : > { %1173 = vmatpush.bf16.msrb.mxu1 %v1164_v1 }
 0x48d   : > { %1591 = vmatmul.msk.bf16.vlgmr.msrb.gmra.mxu1 %vm878_vm2, %v1157_v2 }
 0x50a   : > { %v1175_v6 = vpop.f32.mrf.mxu1 }
 0x50b   : > { %v1179_v7 = vpack.c.bf16 %v1175_v6, %v1175_v6 }
 0x50d   : > { %1592 = vmatmul.msk.bf16.vlgmr.msrb.gmra.mxu2 %vm878_vm2, %v1179_v7 }
 0x512   : > { %v1177_v8 = vpop.f32.mrf.mxu1 }
 0x590   : > { %v1196_v10 = vpop.f32.mrf.mxu2 }
 0x591   : > { %v1200_v11 = vadd.f32 %v1196_v10, %v1120_v59 }
 0x593   : > { %v1205_v12 = vadd.f32 %v1742_v9, %v1200_v11 }
 0x595   : > { %v1206_v13 = vadd.f32 %v1205_v12, %v2279_v4  ;;  %v1630_v4 = vld [vmem:[#allocation12 + $0x8] sm:$0xff] }
 0x596   : > { %1276 = vmatpush.bf16.msrb.mxu3 %v1630_v4  ;;  %v1747_v12 = vld [vmem:[%s2494_s29] ss:$0 sm:$0xff] }
 0x597   : > { %v1209_v14 = vsel %vm779_vm0, %v1206_v13, 0.0 }
 0x598   : > { %v1198_v15 = vpop.f32.mrf.mxu2  ;;  %1210 = vadd.xlane.f32.xlu2 %v1209_v14 }
 0x599   : > { %v1748_v15 = vld [vmem:[%s2497_s11] ss:$0 sm:$0xff] }
 0x59a   : > { %1277 = vmatpush.bf16.msrb.mxu3 %v1629_v28 }
 0x60b   : > { %v1211_v23 = vpop.xlane.xlu2 %1210 }
 0x60c   : > { %v1219_v24 = vmul.f32 %v1218_v22, %v1211_v23 }
 0x60e   : > { %v1220_v25 = vsub.f32 %v1206_v13, %v1219_v24 }
 0x610   : > { %v1221_v26 = vmul.f32 %v1220_v25, %v1220_v25 }
 0x612   : > { %v1222_v27 = vsel %vm779_vm0, %v1221_v26, 0.0 }
 0x613   : > { %1223 = vadd.xlane.f32.xlu1 %v1222_v27 }
 0x686   : > { %v1224_v30 = vpop.xlane.xlu1 %1223 }
 0x687   : > { %v1225_v32 = vmul.f32 %v1224_v30, %v1218_v22 }
 0x689   : > { %v1226_v34 = vadd.f32 1e-06, %v1225_v32 }
 0x68b   : > { %1767 = vrsqrt.f32 %v1226_v34  ;;  %vm1233_vm6 = vweird.f32 %v1226_v34 }
 0x691   : > { %v1768_v35 = vpop.eup %1767 }
 0x692   : > { %v1228_v36 = vmul.f32 %v1768_v35, %v1226_v34  ;;  %vm1234_vm5 = vweird.f32 %v1768_v35 }
 0x693   : > { %vm1235_vm7 = vmor %vm1233_vm6, %vm1234_vm5 }
 0x694   : > { %v1229_v37 = vmul.f32 %v1768_v35, %v1228_v36 }
 0x696   : > { %v1230_v38 = vmul.f32 0.5, %v1229_v37 }
 0x698   : > { %v1231_v39 = vsub.f32 1.5, %v1230_v38 }
 0x69a   : > { %v1232_v40 = vmul.f32 %v1768_v35, %v1231_v39 }
 0x69c   : > { %v1236_v42 = vsel %vm1235_vm7, %v1768_v35, %v1232_v40 }
 0x69d   : > { %v1237_v44 = vmul.f32 %v1236_v42, %v1220_v25 }
 0x69f   : > { %v1241_v45 = vmul.f32 %v1743_v41, %v1237_v44 }
 0x6a1   : > { %v1245_v46 = vadd.f32 %v1744_v43, %v1241_v45 }
 0x6a3   : > { %v1246_v47 = vpack.c.bf16 %v1245_v46, %v1245_v46 }
 0x6a5   : > { %1601 = vmatmul.msk.bf16.vlgmr.msrb.gmra.mxu3 %vm779_vm0, %v1246_v47 }
 0x728   : > { %v1279_v51 = vpop.f32.mrf.mxu3 }
 0x729   : > { %v1280_v52 = vadd.f32 %v1745_v50, %v1279_v51 }
 0x72b   : > { %v1283_v53 = vmax.f32 %v1280_v52, 0.0 }
 0x72d   : > { %v1284_v54 = vpack.c.bf16 %v1283_v53, %v1283_v53 }
 0x72f   : > { %1618 = vmatmul.msk.bf16.vlgmr.msra.gmra.mxu0 %vm1321_vm8, %v1284_v54 }
 0x730   : > { %v1281_v55 = vpop.f32.mrf.mxu3 }
 0x7ac   : > { %v1334_v57 = vpop.f32.mrf.mxu0 }
 0x7ad   : > { %v1335_v31 = vadd.f32 %v1746_v56, %v1334_v57 }
 0x7af   : > { %v1338_v58 = vadd.f32 %v1335_v31, %v1245_v46 }
 0x7b1   : > { %v1341_v59 = vsel %vm779_vm0, %v1338_v58, 0.0 }
 0x7b2   : > { %1342 = vadd.xlane.f32.xlu0 %v1341_v59 }
 0x7b4   : > { %v1336_v60 = vpop.f32.mrf.mxu0 }
 0x825   : > { %v1343_v61 = vpop.xlane.xlu0 %1342 }
 0x826   : > { %v1344_v62 = vmul.f32 %v1343_v61, %v1218_v22 }
 0x828   : > { %v1345_v63 = vsub.f32 %v1338_v58, %v1344_v62 }
 0x82a   : > { %v1346_v0 = vmul.f32 %v1345_v63, %v1345_v63 }
 0x82c   : > { %v1347_v1 = vsel %vm779_vm0, %v1346_v0, 0.0 }
 0x82d   : > { %1348 = vadd.xlane.f32.xlu2 %v1347_v1 }
 0x8a0   : > { %v1349_v2 = vpop.xlane.xlu2 %1348 }
 0x8a1   : > { %v1350_v3 = vmul.f32 %v1349_v2, %v1218_v22 }
 0x8a3   : > { %v1351_v5 = vadd.f32 1e-06, %v1350_v3 }
 0x8a5   : > { %1769 = vrsqrt.f32 %v1351_v5  ;;  %vm1358_vm10 = vweird.f32 %v1351_v5 }
 0x8ab   : > { %v1770_v6 = vpop.eup %1769 }
 0x8ac   : > { %v1353_v7 = vmul.f32 %v1770_v6, %v1351_v5  ;;  %vm1359_vm9 = vweird.f32 %v1770_v6 }
 0x8ad   : > { %vm1360_vm11 = vmor %vm1358_vm10, %vm1359_vm9 }
 0x8ae   : > { %v1354_v8 = vmul.f32 %v1770_v6, %v1353_v7 }
 0x8b0   : > { %v1355_v9 = vmul.f32 0.5, %v1354_v8 }
 0x8b2   : > { %v1356_v10 = vsub.f32 1.5, %v1355_v9 }
 0x8b4   : > { %v1357_v11 = vmul.f32 %v1770_v6, %v1356_v10 }
 0x8b6   : > { %v1361_v13 = vsel %vm1360_vm11, %v1770_v6, %v1357_v11 }
 0x8b7   : > { %v1362_v14 = vmul.f32 %v1361_v13, %v1345_v63 }
 0x8b9   : > { %v1366_v16 = vmul.f32 %v1747_v12, %v1362_v14 }
 0x8bb   : > { %v1370_v17 = vadd.f32 %v1748_v15, %v1366_v16 }
 0x8bd   : > { %1371 = vst.msk [vmem:[%s745_s21] sm:$0xff] %vm779_vm0, %v1370_v17 }
 0x8be   : > { %1948 = shalt.err (!%p1945_p0)
}
 0x8bf   : > { %1651 = dma.vmem_to_hbm [thread:$0]  (%p2213_p4), %s1387_s19, 128, %s1389_s12, %s1373_s15  }
 0x8c0 PF: > { %s2498_s18 = sld [smem:[#allocation19_spill]]  ;;  %p1671_p2 = pnand %p1541_p6, %p2221_p7 }
 0x8c2   : > { %p1672_p5 = pneg %p1671_p2 }
 0x8c6   : > { %s1400_s29 = sand.u32 1, %s2498_s18  }
 0x8c7   : > { %s1401_s9 = scalar_lea.sflag [#allocation6], %s1400_s29 }
 0x8c8   : > { %1990 = dma.done.wait (%p1672_p5), %s1401_s9, 128  }
 0x8c9   : > { %1992 = vsyncadd (%p1672_p5), %s1401_s9, 4294967168  ;;  %s39_s22 = sadd.s32 1, %s2015_s22   ;;  %s2500_s2 = sld [smem:[#allocation20_spill]] }
 0x8ca   : > { %p36_p8 = scmp.ge.s32.totalorder %s39_s22, 4   ;;  %s2501_s20 = sld [smem:[#allocation24_spill]] }
 0x8cb   : > { %s2502_s21 = sld [smem:[#allocation21_spill]]  ;;  %s2504_s0 = smov %s1999_s30 }
 0x8cc   : > { %s2503_s1 = sld [smem:[#allocation22_spill]]  ;;  %38 = sbr.rel (!%p36_p8) target bundleno = 25 (0x19), region = 173 }
 0x8cf   : > { %s2505_s30 = smov %s2500_s2 }
 0x8d1   :  { %1407 = vsyncpa [#allocation5], 1 }
 0x8d2   :  { %1409 = vsyncpa [#allocation5 + $0x1], 1 }
 0x8d3   :  { %1410 = vsyncpa [#allocation8], 1 }
 0x8d4   :  { %1412 = vsyncpa [#allocation8 + $0x1], 1 }
 0x8d5   :  { %1413 = vsyncpa [#allocation11], 1 }
 0x8d6   :  { %1414 = vsyncpa [#allocation6], 1 }
 0x8d7   :  { %1416 = vsyncpa [#allocation6 + $0x1], 1 }

// kernel: tpu_custom_call.1
= control target key start
LH: loop header
LB: loop body
LE: loop exit
PB: predicated region body
PF: predicated region fallthrough
CT: control target
= control target key end

     0   :  { %s2424_s0 = inlined_call_operand.vmem [shape: f32[2,8,32], index: 0, kind: input, shape index: {}]   ;;  %s2425_s1 = inlined_call_operand.hbm [shape: bf16[2,8,32], index: 1, kind: input, shape index: {}]   ;;  %s2426_s2 = inlined_call_operand.hbm [shape: bf16[2,8,8], index: 2, kind: input, shape index: {}]   ;;  %s2427_s3 = inlined_call_operand.vmem [shape: bf16[32,32], index: 3, kind: input, shape index: {}]   ;;  %s2428_s4 = inlined_call_operand.vmem [shape: f32[1,32], index: 4, kind: input, shape index: {}]   ;;  %s2429_s5 = inlined_call_operand.vmem [shape: bf16[32,32], index: 5, kind: input, shape index: {}]   ;;  %s2430_s6 = inlined_call_operand.vmem [shape: f32[1,32], index: 6, kind: input, shape index: {}]   ;;  %s2431_s7 = inlined_call_operand.hbm [shape: bf16[32,32], index: 7, kind: input, shape index: {}]   ;;  %s2432_s8 = inlined_call_operand.vmem [shape: f32[1,32], index: 8, kind: input, shape index: {}]   ;;  %s2433_s9 = inlined_call_operand.hbm [shape: bf16[32,32], index: 9, kind: input, shape index: {}]   ;;  %s2434_s10 = inlined_call_operand.vmem [shape: f32[1,32], index: 10, kind: input, shape index: {}]   ;;  %s2435_s11 = inlined_call_operand.vmem [shape: f32[1,32], index: 11, kind: input, shape index: {}]   ;;  %s2436_s12 = inlined_call_operand.vmem [shape: f32[1,32], index: 12, kind: input, shape index: {}]   ;;  %s2437_s13 = inlined_call_operand.hbm [shape: bf16[32,64], index: 13, kind: input, shape index: {}]   ;;  %s2438_s14 = inlined_call_operand.vmem [shape: f32[1,64], index: 14, kind: input, shape index: {}]   ;;  %s2439_s15 = inlined_call_operand.vmem [shape: bf16[64,32], index: 15, kind: input, shape index: {}]   ;;  %s2440_s16 = inlined_call_operand.vmem [shape: f32[1,32], index: 16, kind: input, shape index: {}]   ;;  %s2441_s17 = inlined_call_operand.vmem [shape: f32[1,32], index: 17, kind: input, shape index: {}]   ;;  %s2442_s18 = inlined_call_operand.vmem [shape: f32[1,32], index: 18, kind: input, shape index: {}]   ;;  %s2443_s19 = inlined_call_operand.hbm [shape: f32[2,8,32], index: 19, kind: output, shape index: {}]  }
   0x1   :  { %2454 = sst [smem:[#allocation26_spill]] %s2424_s0 }
   0x2   :  { %2455 = sst [smem:[#allocation27_spill]] %s2425_s1 }
   0x3   :  { %2456 = sst [smem:[#allocation28_spill]] %s2426_s2 }
   0x4   :  { %2457 = sst [smem:[#allocation29_spill]] %s2427_s3 }
   0x5   :  { %2458 = sst [smem:[#allocation30_spill]] %s2431_s7 }
   0x6   :  { %2459 = sst [smem:[#allocation31_spill]] %s2433_s9 }
   0x7   :  { %2460 = sst [smem:[#allocation32_spill]] %s2435_s11 }
   0x8   :  { %2461 = sst [smem:[#allocation33_spill]] %s2436_s12 }
   0x9   :  { %2462 = sst [smem:[#allocation34_spill]] %s2437_s13 }
   0xa   :  { %2463 = sst [smem:[#allocation35_spill]] %s2438_s14 }
   0xb   :  { %2464 = sst [smem:[#allocation36_spill]] %s2439_s15 }
   0xc   :  { %2465 = sst [smem:[#allocation37_spill]] %s2440_s16 }
   0xd   :  { %2466 = sst [smem:[#allocation38_spill]] %s2441_s17 }
   0xe   :  { %2467 = sst [smem:[#allocation39_spill]] %s2442_s18 }
   0xf   :  { %2468 = sst [smem:[#allocation40_spill]] %s2443_s19 }
  0x10   :  { %24 = vsyncpa [#allocation5], 0 }
  0x11   :  { %26 = vsyncpa [#allocation5 + $0x1], 0 }
  0x12   :  { %27 = vsyncpa [#allocation8], 0 }
  0x13   :  { %29 = vsyncpa [#allocation8 + $0x1], 0 }
  0x14   :  { %30 = vsyncpa [#allocation11], 0 }
  0x15   :  { %31 = vsyncpa [#allocation6], 0 }
  0x16   :  { %33 = vsyncpa [#allocation6 + $0x1], 0  ;;  %s2126_s0 = smov 0   ;;  %s2128_s30 = smov 0  }
  0x17   :  { %s2130_s20 = smov 0   ;;  %s2132_s21 = smov 0  }
  0x18   :  { %s2134_s1 = smov 0   ;;  %s2136_s22 = smov 0  }
  0x19 LB: > { %2469 = sst [smem:[#allocation19_spill]] %s1995_s0  ;;  %s2157_s2 = sadd.s32 4294967295, %s2015_s22   ;;  %s2015_s22 = sphi %s2136_s22, %s39_s22   ;;  %s2011_s1 = sphi %s2134_s1, %s2503_s1   ;;  %s2007_s21 = sphi %s2132_s21, %s2502_s21   ;;  %s2003_s20 = sphi %s2130_s20, %s2501_s20   ;;  %s1999_s30 = sphi %s2128_s30, %s2505_s30   ;;  %s1995_s0 = sphi %s2126_s0, %s2504_s0  }
  0x1a   : > { %2470 = sst [smem:[#allocation20_spill]] %s2003_s20  ;;  %p1537_p0 = scmp.ge.s32.totalorder %s2015_s22, 1 }
  0x1b   : > { %2471 = sst [smem:[#allocation21_spill]] %s2011_s1  ;;  %p100_p1 = scmp.eq.s32.totalorder %s2157_s2, 0 }
  0x1c   : > { %p502_p2 = scmp.lt.s32.totalorder %s2015_s22, 3  ;;  %s2472_s7 = sld [smem:[#allocation30_spill]] }
  0x1d   : > { %s2017_s26 = smov [#allocation9]   ;;  %p1541_p6 = scmp.ge.s32.totalorder %s2015_s22, 2 }
  0x1e   : > { %p2165_p3 = pnand %p1537_p0, %p502_p2  ;;  %s527_s27 = sshll.u32 %s2017_s26, 4  ;;  %s528_s27 = int_to_ptr.vmem [resolvable:$true] %s527_s27 }
  0x1f   : > { %s2475_s9 = sld [smem:[#allocation31_spill]]  ;;  %s2019_s26 = smov 4  }
  0x20   : > { %p1653_p4 = pneg %p2165_p3  ;;  %s2020_s18 = smov [#allocation10]  }
  0x21   : > { %s544_s19 = sshll.u32 %s2020_s18, 4  ;;  %s2476_s13 = sld [smem:[#allocation34_spill]]  ;;  %s545_s19 = int_to_ptr.vmem [resolvable:$true] %s544_s19 }
  0x22   : > { %s525_s25 = sshll.u32 %s2472_s7, 4  ;;  %p2173_p5 = pnand %p1653_p4, %p100_p1  ;;  %s526_s25 = int_to_ptr.hbm [resolvable:$true] %s525_s25 }
  0x23   : > { %s2018_s7 = smov 64   ;;  %s2021_s23 = smov [#allocation12]  }
  0x24   : > { %1656 = dma.hbm_to_vmem [thread:$0]  (!%p2173_p5), %s526_s25, 256, %s528_s27, [#allocation8], %s2018_s7, %s2018_s7, %s2019_s26  }
  0x25   : > { %s542_s24 = sshll.u32 %s2475_s9, 4  ;;  %s567_s9 = sshll.u32 %s2021_s23, 4  ;;  %s543_s24 = int_to_ptr.hbm [resolvable:$true] %s542_s24  ;;  %s568_s9 = int_to_ptr.vmem [resolvable:$true] %s567_s9 }
  0x26   : > { %1659 = dma.hbm_to_vmem [thread:$0]  (!%p2173_p5), %s543_s24, 256, %s545_s19, [#allocation11], %s2018_s7, %s2018_s7, %s2019_s26  }
  0x27   : > { %s565_s29 = sshll.u32 %s2476_s13, 4  ;;  %s1536_s25 = sadd.s32 4294967294, %s2015_s22   ;;  %s566_s29 = int_to_ptr.hbm [resolvable:$true] %s565_s29 }
  0x28   : > { %1662 = dma.hbm_to_vmem [thread:$0]  (!%p2173_p5), %s566_s29, 256, %s568_s9, [#allocation11], %s2018_s7, %s2018_s7, %s2019_s26  }
  0x29   : > { %s51_s18 = sadd.s32 1, %s2011_s1  ;;  %s86_s27 = sadd.s32 1, %s2003_s20 }
  0x2a   : > { %p53_p7 = scmp.ge.s32.totalorder %s51_s18, 2  ;;  %p93_p8 = scmp.ne.s32.totalorder %s2003_s20, %s1999_s30 }
  0x2b   : > { %p94_p9 = scmp.eq.s32.totalorder %s2015_s22, 0  ;;  %p99_p10 = scmp.ne.s32.totalorder %s1999_s30, %s1995_s0 }
  0x2c   : > { %s2507_s18 = smov (%p53_p7, %s51_s18), 0  ;;  %p489_p13 = scmp.eq.s32.totalorder %s2157_s2, 1 }
  0x2d   : > { %2477 = sst [smem:[#allocation22_spill]] %s2507_s18  ;;  %p2200_p11 = por %p94_p9, %p93_p8 }
  0x2e   : > { %p2206_p12 = por %p100_p1, %p99_p10  ;;  %s83_s9 = ssub.s32 %s2011_s1, %s2507_s18 }
  0x2f   : > { %p84_p0 = scmp.eq.s32.totalorder %s83_s9, 0  ;;  %p495_p2 = scmp.eq.s32.totalorder %s1536_s25, 1 }
  0x30   : > { %p2213_p4 = por %p489_p13, %p93_p8  ;;  %p1677_p5 = scmp.lt.s32.totalorder %s2015_s22, 2 }
  0x31   : > { %s2219_s19 = scalar_select %p84_p0, %s2003_s20, %s86_s27  }
  0x32   : > { %s2480_s17 = scalar_select %p2213_p4, 1, 0 }
  0x33   : > { %2482 = sst [smem:[#allocation24_spill]] %s2219_s19  ;;  %p2221_p7 = por %p495_p2, %p99_p10 }
  0x34   : > { %2481 = sst [smem:[#allocation23_spill]] %s2480_s17  ;;  %s606_s24 = sand.u32 1, %s2003_s20  }
  0x35   : > { %s2483_s28 = scalar_select %p2221_p7, 1, 0 }
  0x36   : > { %s1542_s26 = sshll.u32 %s606_s24, 2  ;;  %s1543_s29 = sshll.u32 %s2011_s1, 2 }
  0x37   : > { %2484 = sst [smem:[#allocation25_spill]] %s2483_s28  ;;  %s610_s25 = scalar_lea.vmem [#allocation4], %s1542_s26 }
  0x38   : > { %s2485_s18 = sld [smem:[#allocation27_spill]]  ;;  %s618_s0 = sshll.u32 %s610_s25, 4  ;;  %s619_s0 = int_to_ptr.vmem [resolvable:$true] %s618_s0 }
  0x39   : > { %p1664_p8 = pnand %p1677_p5, %p2200_p11  ;;  %s2486_s17 = sld [smem:[#allocation28_spill]] }
  0x3a   : > { %s625_s11 = sand.u32 1, %s2015_s22   ;;  %s607_s28 = scalar_lea.sflag [#allocation5], %s606_s24 }
  0x3b   : > { %s629_s1 = scalar_lea.vmem [#allocation7], %s1542_s26  ;;  %s626_s13 = scalar_lea.sflag [#allocation8], %s625_s11 }
  0x3c   : > { %s638_s15 = sshll.u32 %s629_s1, 4  ;;  %s639_s15 = int_to_ptr.vmem [resolvable:$true] %s638_s15 }
  0x3e   : > { %s614_s9 = scalar_lea.hbm %s2485_s18, %s1543_s29  ;;  %647 = sbr.rel (%p2165_p3) target bundleno = 2240 (0x8c0), region = 96 }
  0x3f   : > { %s616_s14 = sshll.u32 %s614_s9, 4  ;;  %s634_s12 = scalar_lea.hbm %s2486_s17, %s1543_s29  ;;  %s617_s14 = int_to_ptr.hbm [resolvable:$true] %s616_s14 }
  0x40   : > { %1666 = dma.hbm_to_vmem [thread:$0]  (!%p1664_p8), %s617_s14, 64, %s619_s0, %s607_s28  }
  0x41   : > { %s636_s20 = sshll.u32 %s634_s12, 4  ;;  %s2239_s18 = sand.u32 (!%p2165_p3), 1, %s1999_s30   ;;  %s637_s20 = int_to_ptr.hbm [resolvable:$true] %s636_s20 }
  0x42   : > { %1669 = dma.hbm_to_vmem [thread:$0]  (!%p1664_p8), %s637_s20, 64, %s639_s15, %s626_s13  }
  0x43   : > { %s1547_s16 = sshll.u32 %s2239_s18, 2  ;;  %s650_s17 = scalar_lea.sflag [#allocation5], %s2239_s18 }
  0x44   : > { %s653_s19 = scalar_lea.vmem [#allocation4], %s1547_s16 }
  0x45   : > { %1974 = dma.done.wait (%p2206_p12), %s650_s17, 64  }
  0x46   : > { %1976 = vsyncadd (%p2206_p12), %s650_s17, 4294967232  ;;  %s659_s11 = sand.u32 1, %s2157_s2   ;;  %s2248_s14 = scalar_lea.vmem [#allocation7], %s1547_s16 }
  0x47   : > { %s660_s12 = scalar_lea.sflag [#allocation8], %s659_s11 }
  0x48   : > { %1978 = dma.done.wait (%p2206_p12), %s660_s12, 64  }
  0x49   : > { %1980 = vsyncadd (%p2206_p12), %s660_s12, 4294967232 }
  0x4a   : > { %1982 = dma.done.wait (%p100_p1), [#allocation8], 256  }
  0x4b   : > { %1984 = vsyncadd (%p100_p1), [#allocation8], 4294967040 }
  0x4c   : > { %1986 = dma.done.wait (%p100_p1), [#allocation11], 512  }
  0x4d   : > { %1988 = vsyncadd (%p100_p1), [#allocation11], 4294966784  ;;  %p746_p3 = scmp.lt.s32.totalorder %s2007_s21, 1  ;;  %s2487_s3 = sld [smem:[#allocation26_spill]]  ;;  %v1624_v0 = vld [vmem:[%s2429_s5 + $0x8] sm:$0xff]  ;;  %v1623_v2 = vld [vmem:[%s2429_s5] sm:$0xff] }
  0x4e   : > { %s2488_s23 = sld [smem:[#allocation29_spill]]  ;;  %789 = vmatpush.bf16.msra.mxu0 %v1624_v0  ;;  %v758_v6 = vld [vmem:[%s653_s19] sm:$0xf]  ;;  %vm779_vm0 = vcmask 261120   ;;  %v1739_v7 = vld [vmem:[%s2430_s6] ss:$0 sm:$0xff] }
  0x4f   : > { %s747_s15 = scalar_select %p746_p3, %s2007_s21, 1  ;;  %vm797_vm1 = vcmask 257024   ;;  %v1740_v11 = vld [vmem:[%s2428_s4] ss:$0 sm:$0xff]  ;;  %vm878_vm2 = vcmask 64512   ;;  %v1625_v24 = vld [vmem:[#allocation9] sm:$0xff] }
  0x50   : > { %s2022_s19 = smov 112   ;;  %s2023_s12 = smov 120   ;;  %v1626_v23 = vld [vmem:[#allocation9 + $0x8] sm:$0xff]  ;;  %v835_v30 = vld [vmem:[%s2248_s14] sm:$0xf]  ;;  %vm915_vm3 = vcmask 1043456  }
  0x51   : > { %s1553_s0 = sshll.u32 %s747_s15, 3  ;;  %s2024_s15 = smov 104   ;;  %825 = vmatpush.bf16.msra.mxu1 %v1626_v23  ;;  %v2304_v31 = vunpack.c.l.bf16 %v835_v30  ;;  %v1741_v38 = vld [vmem:[%s2432_s8] ss:$0 sm:$0xff]  ;;  %v933_v62 = vld [vmem:[#allocation10] sm:$0xf] }
  0x52   : > { %790 = vmatpush.bf16.msra.mxu0 %v1623_v2  ;;  %v1026_v63 = vsel %vm915_vm3, %v933_v62, 0  ;;  %s2489_s28 = sld [smem:[#allocation36_spill]]  ;;  %vm1321_vm8 = vcmask 523264  }
  0x53   : > { %s752_s7 = scalar_lea.vmem %s2487_s3, %s1553_s0  ;;  %s2490_s2 = sld [smem:[#allocation32_spill]] }
  0x54   : > { %v1628_v1 = vld [vmem:[%s2488_s23 + $0x8] sm:$0xff]  ;;  %v1627_v3 = vld [vmem:[%s2488_s23] sm:$0xff]  ;;  %s2491_s13 = sld [smem:[#allocation33_spill]]  ;;  %s1552_s3 = sshll.u32 %s2239_s18, 3 }
  0x55   : > { %868 = vmatpush.bf16.msra.mxu2 %v1628_v1  ;;  %v2279_v4 = vld [vmem:[%s752_s7] sm:$0xff]  ;;  %1562 = vmatmul.msk.bf16.vlgmr.msra.gmra.mxu0 %vm779_vm0, %v758_v6  ;;  %s2492_s0 = sld [smem:[#allocation35_spill]]  ;;  %s1620_s7 = sshll.u32 %s2007_s21, 3 }
  0x56   : > { %v837_v5 = vpack.c.bf16 %v2279_v4, %v2279_v4  ;;  %826 = vmatpush.bf16.msra.mxu1 %v1625_v24  ;;  %s2493_s1 = sld [smem:[#allocation37_spill]]  ;;  %s745_s21 = scalar_lea.vmem [#allocation13], %s1552_s3 }
  0x57   : > { %s2494_s29 = sld [smem:[#allocation38_spill]] }
  0x58   : > { %s2495_s25 = sld [smem:[#allocation40_spill]] }
  0x59   : > { %869 = vmatpush.bf16.msra.mxu2 %v1627_v3  ;;  %1571 = vmatmul.msk.bf16.vlgmr.msra.gmra.mxu1 %vm779_vm0, %v758_v6  ;;  %s2497_s11 = sld [smem:[#allocation39_spill]] }
  0x5c   : > { %1580 = vmatmul.msk.bf16.vlgmr.msra.gmra.mxu2 %vm779_vm0, %v837_v5 }
  0x5e   : > { %s1384_s27 = scalar_lea.hbm %s2495_s25, %s1620_s7  ;;  %s1941_s3 = scalar_lea.hbm %s2495_s25, 16 }
  0xd2   : > { %v792_v8 = vpop.f32.mrf.mxu0 }
  0xd3   : > { %v793_v9 = vadd.f32 %v1739_v7, %v792_v8 }
  0xd5   : > { %v796_v10 = vpack.c.bf16 %v793_v9, %v793_v9 }
  0xd6   : > { %v828_v39 = vpop.f32.mrf.mxu1 }
  0xd7   : > { %798 = vst.msk [vmem:[#allocation2] sm:$0xf] %vm797_vm1, %v796_v10  ;;  %v829_v40 = vadd.f32 %v1741_v38, %v828_v39 }
  0xd9   : > { %v832_v41 = vpack.c.bf16 %v829_v40, %v829_v40 }
  0xda   : > { %v794_v13 = vpop.f32.mrf.mxu0 }
  0xdb   : > { %833 = vst.msk [vmem:[#allocation3] sm:$0xf] %vm797_vm1, %v832_v41 }
  0xde   : > { %v876_v15 = vld [vmem:[#allocation2] sm:$0xf]  ;;  %v830_v42 = vpop.f32.mrf.mxu1 }
  0xdf   : > { %v871_v12 = vpop.f32.mrf.mxu2  ;;  %v883_v17 = vsel %vm878_vm2, %v876_v15, 0  ;;  %v940_v18 = vunpack.c.l.b16 %v876_v15 }
  0xe0   : > { %v872_v14 = vadd.f32 %v1740_v11, %v871_v12  ;;  %892 = vmatpush.bf16.xpose.msra.mxu3 %v883_v17 }
  0xe1   : > { %v941_v20 = vpack.c.b16 %v940_v18, %v940_v18 }
  0xe2   : > { %v875_v16 = vpack.c.bf16 %v872_v14, %v872_v14  ;;  %v877_v58 = vld [vmem:[#allocation3] sm:$0xf] }
  0xe3   : > { %1043 = vrot.lane.b32.xlu2 %v941_v20, %s2022_s19  ;;  %942 = vrot.lane.b32.xlu1 %v941_v20, %s2023_s12  ;;  %v917_v59 = vsel %vm915_vm3, %v877_v58, 0  ;;  %v978_v14 = vunpack.c.l.b16 %v877_v58 }
  0xe4   : > { %v935_v21 = vunpack.c.l.b16 %v875_v16  ;;  %926 = vmatpush.bf16.msrb.mxu0 %v917_v59 }
  0xe6   : > { %v936_v22 = vpack.c.b16 %v935_v21, %v935_v21 }
  0xe7   : > { %v873_v19 = vpop.f32.mrf.mxu2  ;;  %1581 = vmatmul.msk.bf16.vlgmr.msra.gmra.mxu3 %vm878_vm2, %v875_v16  ;;  %v979_v16 = vpack.c.b16 %v978_v14, %v978_v14 }
  0xe8   : > { %1035 = vmatpush.bf16.msra.mxu0 %v1026_v63 }
  0xeb   : > { %1041 = vrot.lane.b32.xlu2 %v936_v22, %s2022_s19  ;;  %937 = vrot.lane.b32.xlu1 %v936_v22, %s2023_s12 }
  0xf3   : > { %1121 = vrot.lane.b32.xlu1 %v936_v22, %s2024_s15 }
 0x13d   : > { %v1044_v25 = vpop.permute.xlu2 %1043 }
 0x13e   : > { %v1049_v28 = vsel %vm878_vm2, %v1044_v25, 0 }
 0x145   : > { %v1042_v34 = vpop.permute.xlu2 %1041 }
 0x155   : > { %v943_v26 = vpop.permute.xlu1 %942 }
 0x156   : > { %v948_v27 = vsel %vm878_vm2, %v943_v26, 0 }
 0x157   : > { %957 = vmatpush.bf16.xpose.msrb.mxu1 %v948_v27 }
 0x15d   : > { %v938_v29 = vpop.permute.xlu1 %937 }
 0x15e   : > { %1583 = vmatmul.msk.bf16.vlgmr.msrb.gmra.mxu1 %vm878_vm2, %v938_v29 }
 0x15f   : > { %1058 = vmatpush.bf16.xpose.msra.mxu1 %v1049_v28 }
 0x165   : > { %v1122_v1 = vpop.permute.xlu1 %1121 }
 0x16a   : > { %v894_v32 = vpop.f32.mrf.mxu3 }
 0x16b   : > { %v898_v33 = vmul.f32 0.35355338, %v894_v32 }
 0x16d   : > { %v899_v35 = vadd.f32 %v898_v33, %v2304_v31 }
 0x16e   : > { %1587 = vmatmul.msk.bf16.vlgmr.msra.gmra.mxu1 %vm878_vm2, %v1042_v34  ;;  %v1002_v34 = vld [vmem:[#allocation10 + $0x4] sm:$0xf] }
 0x16f   : > { %v900_v36 = vsel %vm878_vm2, %v899_v35, -inf }
 0x170   : > { %901 = vmax.xlane.f32.xlu0 %v900_v36  ;;  %v1100_v36 = vld [vmem:[#allocation10 + $0x8] sm:$0xf] }
 0x172   : > { %v896_v37 = vpop.f32.mrf.mxu3 }
 0x173   : > { %v1105_v37 = vsel %vm915_vm3, %v1100_v36, 0 }
 0x1db   : > { %v959_v43 = vpop.f32.mrf.mxu1 }
 0x1dc   : > { %v963_v44 = vmul.f32 0.35355338, %v959_v43 }
 0x1de   : > { %v964_v45 = vadd.f32 %v963_v44, %v2304_v31 }
 0x1e0   : > { %v965_v46 = vsel %vm878_vm2, %v964_v45, -inf }
 0x1e1   : > { %966 = vmax.xlane.f32.xlu2 %v965_v46 }
 0x1e3   : > { %v961_v47 = vpop.f32.mrf.mxu1  ;;  %v902_v48 = vpop.xlane.xlu0 %901 }
 0x1e4   : > { %v903_v49 = vsub.f32 %v899_v35, %v902_v48  ;;  %v1007_v35 = vsel %vm915_vm3, %v1002_v34, 0 }
 0x1e5   : > { %1016 = vmatpush.bf16.msrb.mxu3 %v1007_v35 }
 0x1e6   : > { %v904_v50 = vmul.f32 1.442695, %v903_v49 }
 0x1e8   : > { %1749 = vpow2.f32 %v904_v50 }
 0x1e9   : > { %1114 = vmatpush.bf16.msra.mxu3 %v1105_v37 }
 0x1eb   : > { %v1060_v51 = vpop.f32.mrf.mxu1 }
 0x1ec   : > { %v1064_v52 = vmul.f32 0.35355338, %v1060_v51 }
 0x1ee   : > { %v1750_v53 = vpop.eup %1749  ;;  %v1065_v54 = vadd.f32 %v1064_v52, %v2304_v31 }
 0x1ef   : > { %v906_v55 = vsel %vm878_vm2, %v1750_v53, 0.0 }
 0x1f0   : > { %907 = vadd.xlane.f32.xlu0 %v906_v55  ;;  %v1066_v56 = vsel %vm878_vm2, %v1065_v54, -inf }
 0x1f1   : > { %1067 = vmax.xlane.f32.xlu1 %v1066_v56 }
 0x1f3   : > { %v1062_v57 = vpop.f32.mrf.mxu1 }
 0x204   : > { %1123 = vrot.lane.b32.xlu0 %v941_v20, %s2024_s15 }
 0x254   : > { %v967_v60 = vpop.xlane.xlu2 %966 }
 0x255   : > { %v968_v61 = vsub.f32 %v964_v45, %v967_v60 }
 0x257   : > { %v969_v0 = vmul.f32 1.442695, %v968_v61 }
 0x259   : > { %1751 = vpow2.f32 %v969_v0 }
 0x25f   : > { %v1752_v2 = vpop.eup %1751 }
 0x260   : > { %v971_v3 = vsel %vm878_vm2, %v1752_v2, 0.0 }
 0x261   : > { %972 = vadd.xlane.f32.xlu2 %v971_v3  ;;  %v1180_v3 = vld [vmem:[#allocation10 + $0xc] sm:$0xf] }
 0x263   : > { %v908_v5 = vpop.xlane.xlu0 %907 }
 0x264   : > { %1753 = vrcp.f32 %v908_v5  ;;  %v1068_v6 = vpop.xlane.xlu1 %1067  ;;  %v1185_v5 = vsel %vm915_vm3, %v1180_v3, 0 }
 0x265   : > { %v1069_v7 = vsub.f32 %v1065_v54, %v1068_v6 }
 0x267   : > { %v1070_v8 = vmul.f32 1.442695, %v1069_v7 }
 0x269   : > { %1755 = vpow2.f32 %v1070_v8 }
 0x26a   : > { %v1754_v9 = vpop.eup %1753 }
 0x26b   : > { %v910_v10 = vmul.f32 %v1754_v9, %v1750_v53  ;;  %v1742_v9 = vld [vmem:[%s2434_s10] ss:$0 sm:$0xff] }
 0x26d   : > { %v911_v11 = vpack.c.bf16 %v910_v10, %v910_v10 }
 0x26f   : > { %v1756_v12 = vpop.eup %1755  ;;  %1582 = vmatmul.msk.bf16.vlgmr.msrb.gmra.mxu0 %vm878_vm2, %v911_v11 }
 0x270   : > { %v1072_v13 = vsel %vm878_vm2, %v1756_v12, 0.0 }
 0x271   : > { %1073 = vadd.xlane.f32.xlu1 %v1072_v13 }
 0x276   : > { %v1124_v15 = vpop.permute.xlu0 %1123 }
 0x277   : > { %v1129_v17 = vsel %vm878_vm2, %v1124_v15, 0 }
 0x278   : > { %1138 = vmatpush.bf16.xpose.msrb.mxu0 %v1129_v17 }
 0x279   : > { %980 = vrot.lane.b32.xlu2 %v979_v16, %s2023_s12  ;;  %s1388_s12 = sshll.u32 %s1384_s27, 4  ;;  %s1389_s12 = int_to_ptr.hbm [resolvable:$true] %s1388_s12 }
 0x28a   : > { %1078 = vrot.lane.b32.xlu1 %v979_v16, %s2022_s19  ;;  %s1386_s19 = sshll.u32 %s745_s21, 4  ;;  %s1387_s19 = int_to_ptr.vmem [resolvable:$true] %s1386_s19 }
 0x2d4   : > { %v973_v18 = vpop.xlane.xlu2 %972 }
 0x2d5   : > { %1757 = vrcp.f32 %v973_v18 }
 0x2db   : > { %v1758_v19 = vpop.eup %1757 }
 0x2dc   : > { %v975_v20 = vmul.f32 %v1758_v19, %v1752_v2  ;;  %v981_v21 = vpop.permute.xlu2 %980 }
 0x2dd   : > { %v986_v22 = vsel %vm915_vm3, %v981_v21, 0 }
 0x2de   : > { %995 = vmatpush.bf16.msrb.mxu2 %v986_v22  ;;  %v976_v23 = vpack.c.bf16 %v975_v20, %v975_v20 }
 0x2e1   : > { %1584 = vmatmul.msk.bf16.vlgmr.msrb.gmra.mxu2 %vm878_vm2, %v976_v23 }
 0x2e4   : > { %v1074_v26 = vpop.xlane.xlu1 %1073 }
 0x2e5   : > { %1759 = vrcp.f32 %v1074_v26 }
 0x2eb   : > { %v1760_v28 = vpop.eup %1759 }
 0x2ec   : > { %v928_v24 = vpop.f32.mrf.mxu0  ;;  %v1076_v29 = vmul.f32 %v1760_v28, %v1756_v12  ;;  %v1629_v28 = vld [vmem:[#allocation12] sm:$0xff] }
 0x2ed   : > { %v932_v25 = vpack.c.bf16 %v928_v24, %v928_v24 }
 0x2ee   : > { %v1077_v33 = vpack.c.bf16 %v1076_v29, %v1076_v29  ;;  %v1634_v29 = vld [vmem:[%s2489_s28 + $0x18] sm:$0xff] }
 0x2ef   : > { %1586 = vmatmul.msk.bf16.vlgmr.msra.gmra.mxu0 %vm878_vm2, %v932_v25 }
 0x2f0   : > { %1329 = vmatpush.bf16.msra.mxu0 %v1634_v29 }
 0x2f4   : > { %v930_v27 = vpop.f32.mrf.mxu0 }
 0x2fc   : > { %v1079_v30 = vpop.permute.xlu1 %1078 }
 0x2fd   : > { %v1084_v32 = vsel %vm915_vm3, %v1079_v30, 0 }
 0x2fe   : > { %1093 = vmatpush.bf16.msra.mxu2 %v1084_v32 }
 0x2ff   : > { %1590 = vmatmul.msk.bf16.vlgmr.msrb.gmra.mxu0 %vm878_vm2, %v1122_v1 }
 0x301   : > { %1588 = vmatmul.msk.bf16.vlgmr.msra.gmra.mxu2 %vm878_vm2, %v1077_v33  ;;  %v1633_v33 = vld [vmem:[%s2489_s28 + $0x10] sm:$0xff] }
 0x302   : > { %1194 = vmatpush.bf16.msrb.mxu2 %v1185_v5  ;;  %1330 = vmatpush.bf16.msra.mxu0 %v1633_v33 }
 0x364   : > { %v997_v38 = vpop.f32.mrf.mxu2 }
 0x365   : > { %v1001_v39 = vpack.c.bf16 %v997_v38, %v997_v38 }
 0x367   : > { %1585 = vmatmul.msk.bf16.vlgmr.msrb.gmra.mxu3 %vm878_vm2, %v1001_v39 }
 0x36c   : > { %v999_v40 = vpop.f32.mrf.mxu2  ;;  %v1037_v41 = vpop.f32.mrf.mxu0 }
 0x374   : > { %v1039_v42 = vpop.f32.mrf.mxu0 }
 0x37c   : > { %v1140_v43 = vpop.f32.mrf.mxu0 }
 0x37d   : > { %v1144_v44 = vmul.f32 0.35355338, %v1140_v43  ;;  %v1744_v43 = vld [vmem:[%s2491_s13] ss:$0 sm:$0xff] }
 0x37f   : > { %v1145_v45 = vadd.f32 %v1144_v44, %v2304_v31 }
 0x381   : > { %v1146_v46 = vsel %vm878_vm2, %v1145_v45, -inf }
 0x382   : > { %1147 = vmax.xlane.f32.xlu0 %v1146_v46 }
 0x384   : > { %v1095_v47 = vpop.f32.mrf.mxu2  ;;  %v1142_v48 = vpop.f32.mrf.mxu0 }
 0x385   : > { %v1099_v49 = vpack.c.bf16 %v1095_v47, %v1095_v47  ;;  %v1632_v48 = vld [vmem:[%s2489_s28 + $0x8] sm:$0xff] }
 0x386   : > { %1331 = vmatpush.bf16.msra.mxu0 %v1632_v48 }
 0x387   : > { %1589 = vmatmul.msk.bf16.vlgmr.msra.gmra.mxu3 %vm878_vm2, %v1099_v49  ;;  %v1631_v49 = vld [vmem:[%s2489_s28] sm:$0xff] }
 0x38a   : > { %1332 = vmatpush.bf16.msra.mxu0 %v1631_v49 }
 0x38c   : > { %v1097_v50 = vpop.f32.mrf.mxu2 }
 0x38d   : > { %v1745_v50 = vld [vmem:[%s2492_s0] ss:$0 sm:$0xff]  ;;  %s1935_s0 = sshra.s32 %s1389_s12, 4  ;;  %s1936_s0 = int_to_ptr.hbm [resolvable:$true] %s1935_s0 }
 0x38e   : > { %s1937_s20 = scalar_lea.hbm %s1936_s0, 8  ;;  %p1942_p11 = scmp.lt.s32.totalorder %s1936_s0, %s2495_s25 }
 0x38f   : > { %p1938_p1 = scmp.ne.s32.totalorder %s1936_s0, %s1937_s20  ;;  %p1943_p12 = scmp.lt.s32.totalorder %s1941_s3, %s1937_s20 }
 0x391   : > { %p1939_p9 = pnand %p1938_p1, %p2213_p4  ;;  %p1944_p13 = por %p1943_p12, %p1942_p11 }
 0x393   : > { %p1940_p10 = pneg %p1939_p9 }
 0x395   : > { %p1945_p0 = pnand %p1944_p13, %p1940_p10 }
 0x3ea   : > { %v1018_v51 = vpop.f32.mrf.mxu3 }
 0x3eb   : > { %v1038_v31 = vadd.f32 %v1037_v41, %v1018_v51  ;;  %v1743_v41 = vld [vmem:[%s2490_s2] ss:$0 sm:$0xff] }
 0x3f2   : > { %v1020_v52 = vpop.f32.mrf.mxu3 }
 0x3f5   : > { %v1148_v53 = vpop.xlane.xlu0 %1147 }
 0x3f6   : > { %v1149_v54 = vsub.f32 %v1145_v45, %v1148_v53 }
 0x3f8   : > { %v1150_v55 = vmul.f32 1.442695, %v1149_v54 }
 0x3fa   : > { %1761 = vpow2.f32 %v1150_v55 }
 0x400   : > { %v1762_v56 = vpop.eup %1761 }
 0x401   : > { %v1152_v57 = vsel %vm878_vm2, %v1762_v56, 0.0 }
 0x402   : > { %1153 = vadd.xlane.f32.xlu0 %v1152_v57 }
 0x40a   : > { %v1116_v58 = vpop.f32.mrf.mxu3 }
 0x40b   : > { %v1120_v59 = vadd.f32 %v1116_v58, %v1038_v31 }
 0x412   : > { %v1118_v60 = vpop.f32.mrf.mxu3 }
 0x416   : > { %1158 = vrot.lane.b32.xlu0 %v979_v16, %s2024_s15  ;;  %v2025_v16 = vmov 32.0   ;;  %s1373_s15 = scalar_lea.sflag [#allocation6], %s2239_s18 }
 0x475   : > { %v1154_v61 = vpop.xlane.xlu0 %1153 }
 0x476   : > { %1763 = vrcp.f32 %v1154_v61 }
 0x477   : > { %1765 = vrcp.f32 %v2025_v16 }
 0x47c   : > { %v1764_v62 = vpop.eup %1763 }
 0x47d   : > { %v1156_v63 = vmul.f32 %v1764_v62, %v1762_v56  ;;  %v1766_v17 = vpop.eup %1765  ;;  %v1746_v56 = vld [vmem:[%s2493_s1] ss:$0 sm:$0xff] }
 0x47e   : > { %v1213_v18 = vmul.f32 32.0, %v1766_v17  ;;  %vm1217_vm4 = vweird.f32 %v1766_v17 }
 0x47f   : > { %v1157_v2 = vpack.c.bf16 %v1156_v63, %v1156_v63 }
 0x480   : > { %v1214_v19 = vsub.f32 1.0, %v1213_v18 }
 0x482   : > { %v1215_v20 = vmul.f32 %v1766_v17, %v1214_v19 }
 0x484   : > { %v1216_v21 = vadd.f32 %v1766_v17, %v1215_v20 }
 0x486   : > { %v1218_v22 = vsel %vm1217_vm4, %v1766_v17, %v1216_v21 }
 0x488   : > { %v1159_v0 = vpop.permute.xlu0 %1158 }
 0x489   : > { %v1164_v1 = vsel %vm915_vm3, %v1159_v0, 0 }
 0x48a   : > { %1173 = vmatpush.bf16.msrb.mxu1 %v1164_v1 }
 0x48d   : > { %1591 = vmatmul.msk.bf16.vlgmr.msrb.gmra.mxu1 %vm878_vm2, %v1157_v2 }
 0x50a   : > { %v1175_v6 = vpop.f32.mrf.mxu1 }
 0x50b   : > { %v1179_v7 = vpack.c.bf16 %v1175_v6, %v1175_v6 }
 0x50d   : > { %1592 = vmatmul.msk.bf16.vlgmr.msrb.gmra.mxu2 %vm878_vm2, %v1179_v7 }
 0x512   : > { %v1177_v8 = vpop.f32.mrf.mxu1 }
 0x590   : > { %v1196_v10 = vpop.f32.mrf.mxu2 }
 0x591   : > { %v1200_v11 = vadd.f32 %v1196_v10, %v1120_v59 }
 0x593   : > { %v1205_v12 = vadd.f32 %v1742_v9, %v1200_v11 }
 0x595   : > { %v1206_v13 = vadd.f32 %v1205_v12, %v2279_v4  ;;  %v1630_v4 = vld [vmem:[#allocation12 + $0x8] sm:$0xff] }
 0x596   : > { %1276 = vmatpush.bf16.msrb.mxu3 %v1630_v4  ;;  %v1747_v12 = vld [vmem:[%s2494_s29] ss:$0 sm:$0xff] }
 0x597   : > { %v1209_v14 = vsel %vm779_vm0, %v1206_v13, 0.0 }
 0x598   : > { %v1198_v15 = vpop.f32.mrf.mxu2  ;;  %1210 = vadd.xlane.f32.xlu2 %v1209_v14 }
 0x599   : > { %v1748_v15 = vld [vmem:[%s2497_s11] ss:$0 sm:$0xff] }
 0x59a   : > { %1277 = vmatpush.bf16.msrb.mxu3 %v1629_v28 }
 0x60b   : > { %v1211_v23 = vpop.xlane.xlu2 %1210 }
 0x60c   : > { %v1219_v24 = vmul.f32 %v1218_v22, %v1211_v23 }
 0x60e   : > { %v1220_v25 = vsub.f32 %v1206_v13, %v1219_v24 }
 0x610   : > { %v1221_v26 = vmul.f32 %v1220_v25, %v1220_v25 }
 0x612   : > { %v1222_v27 = vsel %vm779_vm0, %v1221_v26, 0.0 }
 0x613   : > { %1223 = vadd.xlane.f32.xlu1 %v1222_v27 }
 0x686   : > { %v1224_v30 = vpop.xlane.xlu1 %1223 }
 0x687   : > { %v1225_v32 = vmul.f32 %v1224_v30, %v1218_v22 }
 0x689   : > { %v1226_v34 = vadd.f32 1e-06, %v1225_v32 }
 0x68b   : > { %1767 = vrsqrt.f32 %v1226_v34  ;;  %vm1233_vm6 = vweird.f32 %v1226_v34 }
 0x691   : > { %v1768_v35 = vpop.eup %1767 }
 0x692   : > { %v1228_v36 = vmul.f32 %v1768_v35, %v1226_v34  ;;  %vm1234_vm5 = vweird.f32 %v1768_v35 }
 0x693   : > { %vm1235_vm7 = vmor %vm1233_vm6, %vm1234_vm5 }
 0x694   : > { %v1229_v37 = vmul.f32 %v1768_v35, %v1228_v36 }
 0x696   : > { %v1230_v38 = vmul.f32 0.5, %v1229_v37 }
 0x698   : > { %v1231_v39 = vsub.f32 1.5, %v1230_v38 }
 0x69a   : > { %v1232_v40 = vmul.f32 %v1768_v35, %v1231_v39 }
 0x69c   : > { %v1236_v42 = vsel %vm1235_vm7, %v1768_v35, %v1232_v40 }
 0x69d   : > { %v1237_v44 = vmul.f32 %v1236_v42, %v1220_v25 }
 0x69f   : > { %v1241_v45 = vmul.f32 %v1743_v41, %v1237_v44 }
 0x6a1   : > { %v1245_v46 = vadd.f32 %v1744_v43, %v1241_v45 }
 0x6a3   : > { %v1246_v47 = vpack.c.bf16 %v1245_v46, %v1245_v46 }
 0x6a5   : > { %1601 = vmatmul.msk.bf16.vlgmr.msrb.gmra.mxu3 %vm779_vm0, %v1246_v47 }
 0x728   : > { %v1279_v51 = vpop.f32.mrf.mxu3 }
 0x729   : > { %v1280_v52 = vadd.f32 %v1745_v50, %v1279_v51 }
 0x72b   : > { %v1283_v53 = vmax.f32 %v1280_v52, 0.0 }
 0x72d   : > { %v1284_v54 = vpack.c.bf16 %v1283_v53, %v1283_v53 }
 0x72f   : > { %1618 = vmatmul.msk.bf16.vlgmr.msra.gmra.mxu0 %vm1321_vm8, %v1284_v54 }
 0x730   : > { %v1281_v55 = vpop.f32.mrf.mxu3 }
 0x7ac   : > { %v1334_v57 = vpop.f32.mrf.mxu0 }
 0x7ad   : > { %v1335_v31 = vadd.f32 %v1746_v56, %v1334_v57 }
 0x7af   : > { %v1338_v58 = vadd.f32 %v1335_v31, %v1245_v46 }
 0x7b1   : > { %v1341_v59 = vsel %vm779_vm0, %v1338_v58, 0.0 }
 0x7b2   : > { %1342 = vadd.xlane.f32.xlu0 %v1341_v59 }
 0x7b4   : > { %v1336_v60 = vpop.f32.mrf.mxu0 }
 0x825   : > { %v1343_v61 = vpop.xlane.xlu0 %1342 }
 0x826   : > { %v1344_v62 = vmul.f32 %v1343_v61, %v1218_v22 }
 0x828   : > { %v1345_v63 = vsub.f32 %v1338_v58, %v1344_v62 }
 0x82a   : > { %v1346_v0 = vmul.f32 %v1345_v63, %v1345_v63 }
 0x82c   : > { %v1347_v1 = vsel %vm779_vm0, %v1346_v0, 0.0 }
 0x82d   : > { %1348 = vadd.xlane.f32.xlu2 %v1347_v1 }
 0x8a0   : > { %v1349_v2 = vpop.xlane.xlu2 %1348 }
 0x8a1   : > { %v1350_v3 = vmul.f32 %v1349_v2, %v1218_v22 }
 0x8a3   : > { %v1351_v5 = vadd.f32 1e-06, %v1350_v3 }
 0x8a5   : > { %1769 = vrsqrt.f32 %v1351_v5  ;;  %vm1358_vm10 = vweird.f32 %v1351_v5 }
 0x8ab   : > { %v1770_v6 = vpop.eup %1769 }
 0x8ac   : > { %v1353_v7 = vmul.f32 %v1770_v6, %v1351_v5  ;;  %vm1359_vm9 = vweird.f32 %v1770_v6 }
 0x8ad   : > { %vm1360_vm11 = vmor %vm1358_vm10, %vm1359_vm9 }
 0x8ae   : > { %v1354_v8 = vmul.f32 %v1770_v6, %v1353_v7 }
 0x8b0   : > { %v1355_v9 = vmul.f32 0.5, %v1354_v8 }
 0x8b2   : > { %v1356_v10 = vsub.f32 1.5, %v1355_v9 }
 0x8b4   : > { %v1357_v11 = vmul.f32 %v1770_v6, %v1356_v10 }
 0x8b6   : > { %v1361_v13 = vsel %vm1360_vm11, %v1770_v6, %v1357_v11 }
 0x8b7   : > { %v1362_v14 = vmul.f32 %v1361_v13, %v1345_v63 }
 0x8b9   : > { %v1366_v16 = vmul.f32 %v1747_v12, %v1362_v14 }
 0x8bb   : > { %v1370_v17 = vadd.f32 %v1748_v15, %v1366_v16 }
 0x8bd   : > { %1371 = vst.msk [vmem:[%s745_s21] sm:$0xff] %vm779_vm0, %v1370_v17 }
 0x8be   : > { %1948 = shalt.err (!%p1945_p0)
}
 0x8bf   : > { %1651 = dma.vmem_to_hbm [thread:$0]  (%p2213_p4), %s1387_s19, 128, %s1389_s12, %s1373_s15  }
 0x8c0 PF: > { %s2498_s18 = sld [smem:[#allocation19_spill]]  ;;  %p1671_p2 = pnand %p1541_p6, %p2221_p7 }
 0x8c2   : > { %p1672_p5 = pneg %p1671_p2 }
 0x8c6   : > { %s1400_s29 = sand.u32 1, %s2498_s18  }
 0x8c7   : > { %s1401_s9 = scalar_lea.sflag [#allocation6], %s1400_s29 }
 0x8c8   : > { %1990 = dma.done.wait (%p1672_p5), %s1401_s9, 128  }
 0x8c9   : > { %1992 = vsyncadd (%p1672_p5), %s1401_s9, 4294967168  ;;  %s39_s22 = sadd.s32 1, %s2015_s22   ;;  %s2500_s2 = sld [smem:[#allocation20_spill]] }
 0x8ca   : > { %p36_p8 = scmp.ge.s32.totalorder %s39_s22, 4   ;;  %s2501_s20 = sld [smem:[#allocation24_spill]] }
 0x8cb   : > { %s2502_s21 = sld [smem:[#allocation21_spill]]  ;;  %s2504_s0 = smov %s1999_s30 }
 0x8cc   : > { %s2503_s1 = sld [smem:[#allocation22_spill]]  ;;  %38 = sbr.rel (!%p36_p8) target bundleno = 25 (0x19), region = 173 }
 0x8cf   : > { %s2505_s30 = smov %s2500_s2 }
 0x8d1   :  { %1407 = vsyncpa [#allocation5], 1 }
 0x8d2   :  { %1409 = vsyncpa [#allocation5 + $0x1], 1 }
 0x8d3   :  { %1410 = vsyncpa [#allocation8], 1 }
 0x8d4   :  { %1412 = vsyncpa [#allocation8 + $0x1], 1 }
 0x8d5   :  { %1413 = vsyncpa [#allocation11], 1 }
 0x8d6   :  { %1414 = vsyncpa [#allocation6], 1 }
 0x8d7   :  { %1416 = vsyncpa [#allocation6 + $0x1], 1 }

</bundles_post_ra>
